<compile_context>
chip_gen: v7x
topology: tpu7x:2x2x1
jax: 0.10.0
libtpu: 0.0.40
codegen_flags: <defaults>
</compile_context>

<pallas_src>
import jax
import jax.numpy as jnp
from jax import lax
from jax.experimental import pallas as pl
from jax.experimental.pallas import tpu as pltpu


H_INPUT = 120
HIDDEN = 2048
NUM_LAYERS = 8

LANE = 128
SUBLANE = 8
K0_PAD = 128            # H_INPUT (120) padded up to one lane group
TILE_N = 512            # 2048 / 512 = 4 weight tiles per layer (2 MiB bf16 each)
COMPUTE_DTYPE = jnp.bfloat16


def _round_up(x, m):
    return ((x + m - 1) // m) * m


# ----------------------------------------------------------------------------
# Fused kernel: one grid step = one output-column tile of one layer.
# grid = (layer, n_tile); both axes sequential; activations stay in VMEM.
# ----------------------------------------------------------------------------
def _fused_mlp_kernel(x_ref, w0_ref, w_ref, b_ref, o_ref, act_ref):
    l = pl.program_id(0)
    j = pl.program_id(1)
    col = pl.multiple_of(j * TILE_N, TILE_N)
    dst = lax.rem(l, 2)           # activation slot written by layer l
    bias = b_ref[0]               # (1, TILE_N) f32

    @pl.when(l == 0)
    def _():
        # Layer 0: input is the VMEM-resident padded z (M, 128); weight is the
        # VMEM-resident (128, 2048) bf16 w0 -> slice the current column tile.
        acc = jnp.dot(
            x_ref[...],
            w0_ref[:, pl.ds(col, TILE_N)],
            preferred_element_type=jnp.float32,
        )
        y = acc + bias
        act_ref[dst, :, pl.ds(col, TILE_N)] = y.astype(act_ref.dtype)
        o_ref[...] = y.astype(o_ref.dtype)   # overwritten by the last layer

    @pl.when(l > 0)
    def _():
        # Layers 1..7: read the full previous-layer activation from the
        # ping-pong scratch, stream one (2048, TILE_N) bf16 weight tile.
        src = lax.rem(l + 1, 2)   # == (l - 1) % 2
        acc = jnp.dot(
            act_ref[src],
            w_ref[0],
            preferred_element_type=jnp.float32,
        )
        y = acc + bias
        act_ref[dst, :, pl.ds(col, TILE_N)] = y.astype(act_ref.dtype)
        o_ref[...] = y.astype(o_ref.dtype)   # last layer's write is the result


def _w_index_map(l, j):
    # Layer l>=1 uses stacked-weight plane l-1, column tile j.
    # During layer 0 (which uses w0 instead) we park on plane 0 / tile 0 so the
    # pipeline prefetches layer 1's first tile with no redundant re-fetch.
    return (jnp.maximum(l - 1, 0), 0, jnp.where(l > 0, j, 0))


def fused_generator_mlp(x, w0_t, w_rest, b_stack):
    """x:      (M, K0_PAD) bf16   (M multiple of 8, zero-padded batch/features)
       w0_t:   (K0_PAD, HIDDEN) bf16   (layer-0 weight, pre-transposed/padded)
       w_rest: (NUM_LAYERS-1, HIDDEN, HIDDEN) bf16 (layers 1..7, pre-transposed)
       b_stack:(NUM_LAYERS, 1, HIDDEN) f32
       returns (M, HIDDEN) f32 — output of the final layer."""
    M, K0 = x.shape
    Lm1, K, N = w_rest.shape
    assert K0 == K0_PAD and K == HIDDEN and N == HIDDEN
    assert M % SUBLANE == 0 and N % TILE_N == 0
    n_tiles = N // TILE_N

    flops = 2 * M * (K0 * N + Lm1 * K * N)
    bytes_accessed = (
        x.size * 2 + w0_t.size * 2 + w_rest.size * 2 + b_stack.size * 4 + M * N * 4
    )

    return pl.pallas_call(
        _fused_mlp_kernel,
        out_shape=jax.ShapeDtypeStruct((M, N), jnp.float32),
        grid_spec=pltpu.PrefetchScalarGridSpec(
            num_scalar_prefetch=0,
            grid=(NUM_LAYERS, n_tiles),
            in_specs=[
                # Padded input: fully VMEM-resident (DMA'd once).
                pl.BlockSpec((M, K0), lambda l, j: (0, 0)),
                # Layer-0 weight: fully VMEM-resident (0.5 MiB, DMA'd once).
                pl.BlockSpec((K0, N), lambda l, j: (0, 0)),
                # Layers 1..7 weights: the streamed 2 MiB column tiles.
                pl.BlockSpec((1, K, TILE_N), _w_index_map),
                # Per-layer bias column tile (tiny).
                pl.BlockSpec((1, 1, TILE_N), lambda l, j: (l, 0, j)),
            ],
            out_specs=pl.BlockSpec((M, TILE_N), lambda l, j: (0, j)),
            scratch_shapes=[
                # Ping-pong activation buffer: 2 x (M, HIDDEN) bf16 = 64 KiB.
                pltpu.VMEM((2, M, N), COMPUTE_DTYPE),
            ],
        ),
        compiler_params=pltpu.CompilerParams(
            # Layer axis and N axis both carry sequential deps through the
            # VMEM-resident activation scratch.
            dimension_semantics=("arbitrary", "arbitrary"),
        ),
        cost_estimate=pl.CostEstimate(
            flops=flops, transcendentals=0, bytes_accessed=bytes_accessed
        ),
    )(x, w0_t, w_rest, b_stack)


# ----------------------------------------------------------------------------
# Parameter setup (PyTorch nn.Linear layout/init), then one-time prep.
# ----------------------------------------------------------------------------
def init_parthj_params(key):
    """Deterministic init. Layer i: weight (out, in), bias (out,)."""
    params = []
    dims = [(H_INPUT, HIDDEN)] + [(HIDDEN, HIDDEN)] * (NUM_LAYERS - 1)
    for fan_in, fan_out in dims:
        kw, kb, key = jax.random.split(key, 3)
        bound = 1.0 / jnp.sqrt(fan_in)  # PyTorch default uniform bound
        w = jax.random.uniform(
            kw, (fan_out, fan_in), jnp.float32, minval=-bound, maxval=bound
        )
        b = jax.random.uniform(
            kb, (fan_out,), jnp.float32, minval=-bound, maxval=bound
        )
        params.append((w, b))
    return params


def prepare_params(params, compute_dtype=COMPUTE_DTYPE):
    """One-time prep (outside the hot path): transpose to (in, out), pad
    layer-0's K to a lane multiple, stack layers 1..7, cast to bf16."""
    w0, _ = params[0]
    w0_t = jnp.transpose(w0)                                      # (120, 2048)
    w0_t = jnp.pad(w0_t, ((0, K0_PAD - H_INPUT), (0, 0)))          # (128, 2048)
    w0_t = w0_t.astype(compute_dtype)
    w_rest = jnp.stack(
        [jnp.transpose(w) for (w, _) in params[1:]]
    ).astype(compute_dtype)                                        # (7, 2048, 2048)
    b_stack = jnp.stack([b for (_, b) in params]).reshape(
        NUM_LAYERS, 1, HIDDEN
    ).astype(jnp.float32)                                          # (8, 1, 2048)
    return w0_t, w_rest, b_stack


# ----------------------------------------------------------------------------
# Forward: single fused pallas_call over all 8 layers.
# ----------------------------------------------------------------------------
@jax.jit
def generator_forward(z, w0_t, w_rest, b_stack):
    """z: (B, 120) float32 -> (B, 2048) float32 via the fused 8-layer chain."""
    B, K = z.shape
    M = _round_up(max(B, SUBLANE), SUBLANE)            # pad batch to sublane
    x = jnp.pad(z, ((0, M - B), (0, K0_PAD - K))).astype(COMPUTE_DTYPE)
    out = fused_generator_mlp(x, w0_t, w_rest, b_stack)
    return out[:B]


# ----------------------------------------------------------------------------
if __name__ == "__main__":
    key = jax.random.PRNGKey(0)
    kx, kp = jax.random.split(key)

    batch = 2
    z = jax.random.normal(kx, (batch, H_INPUT), dtype=jnp.float32)
    params = init_parthj_params(kp)
    w0_t, w_rest, b_stack = prepare_params(params)

    y = generator_forward(z, w0_t, w_rest, b_stack)
    jax.block_until_ready(y)
    assert y.shape == (batch, HIDDEN), y.shape

    # Sanity check against plain JAX using the same bf16 rounding the kernel
    # applies to activations and weights (f32 accumulation in both cases).
    h = z
    for w, b in params:
        h_bf = h.astype(jnp.bfloat16).astype(jnp.float32)
        w_bf = jnp.transpose(w).astype(jnp.bfloat16).astype(jnp.float32)
        h = h_bf @ w_bf + b
    assert jnp.allclose(y, h, rtol=2e-2, atol=2e-2), float(
        jnp.max(jnp.abs(y - h))
    )

    print("KERNEL_OK")
</pallas_src>

<mosaic_0001>
module attributes {stable_mosaic.version = 11 : i64} {
  func.func @_fused_mlp_kernel(%arg0: i32, %arg1: i32, %arg2: memref<8x128xbf16, #tpu.memory_space<vmem>>, %arg3: memref<128x2048xbf16, #tpu.memory_space<vmem>>, %arg4: memref<1x2048x512xbf16, #tpu.memory_space<vmem>>, %arg5: memref<1x1x512xf32, #tpu.memory_space<vmem>>, %arg6: memref<8x512xf32, #tpu.memory_space<vmem>>, %arg7: memref<2x8x2048xbf16, #tpu.memory_space<vmem>>) attributes {dimension_semantics = [#tpu.dimension_semantics<arbitrary>, #tpu.dimension_semantics<arbitrary>], iteration_bounds = array<i64: 8, 4>, scalar_prefetch = 0 : i64, scratch_operands = 1 : i64, tpu.core_type = #tpu.core_type<tc>, window_params = [{pipeline_mode = #tpu.pipeline_mode<synchronous>, transform_indices = @transform_0, window_bounds = array<i64: 8, 128>}, {pipeline_mode = #tpu.pipeline_mode<synchronous>, transform_indices = @transform_1, window_bounds = array<i64: 128, 2048>}, {transform_indices = @transform_2, window_bounds = array<i64: 1, 2048, 512>}, {transform_indices = @transform_3, window_bounds = array<i64: 1, 1, 512>}, {transform_indices = @transform_4, window_bounds = array<i64: 8, 512>}]} {
    %c512_i32 = arith.constant 512 : i32
    %0 = arith.muli %arg1, %c512_i32 : i32
    %1 = tpu.assume_multiple %0, 512 : i32
    %c2_i32 = arith.constant 2 : i32
    %2 = arith.remsi %arg0, %c2_i32 : i32
    %c0 = arith.constant 0 : index
    %c0_0 = arith.constant 0 : index
    %c0_1 = arith.constant 0 : index
    %3 = vector.load %arg5[%c0, %c0_0, %c0_1] : memref<1x1x512xf32, #tpu.memory_space<vmem>>, vector<1x1x512xf32>
    %4 = vector.shape_cast %3 : vector<1x1x512xf32> to vector<1x512xf32>
    %c0_i32 = arith.constant 0 : i32
    %5 = arith.cmpi eq, %arg0, %c0_i32 : i32
    %6 = arith.extui %5 : i1 to i32
    %c0_i32_2 = arith.constant 0 : i32
    %7 = arith.cmpi ne, %6, %c0_i32_2 : i32
    scf.if %7 {
      %c0_5 = arith.constant 0 : index
      %c0_6 = arith.constant 0 : index
      %11 = vector.load %arg2[%c0_5, %c0_6] : memref<8x128xbf16, #tpu.memory_space<vmem>>, vector<8x128xbf16>
      %c0_7 = arith.constant 0 : index
      %12 = arith.index_cast %1 : i32 to index
      %13 = vector.load %arg3[%c0_7, %12] : memref<128x2048xbf16, #tpu.memory_space<vmem>>, vector<128x512xbf16>
      %cst = arith.constant dense<0.000000e+00> : vector<8x512xf32>
      %14 = tpu.matmul %11, %13, %cst {dimension_numbers = #tpu.dot_dimension_numbers<[1], [0], [0], [1], [0, 0, 1, 1], [], []>} : vector<8x128xbf16>, vector<128x512xbf16>, vector<8x512xf32> -> vector<8x512xf32>
      %15 = vector.broadcast %4 : vector<1x512xf32> to vector<8x512xf32>
      %16 = arith.addf %14, %15 : vector<8x512xf32>
      %17 = arith.truncf %16 : vector<8x512xf32> to vector<8x512xbf16>
      %18 = arith.index_cast %2 : i32 to index
      %c0_8 = arith.constant 0 : index
      %19 = arith.index_cast %1 : i32 to index
      %20 = vector.load %arg7[%18, %c0_8, %19] : memref<2x8x2048xbf16, #tpu.memory_space<vmem>>, vector<1x8x512xbf16>
      %21 = vector.shape_cast %20 : vector<1x8x512xbf16> to vector<8x512xbf16>
      %22 = vector.shape_cast %17 : vector<8x512xbf16> to vector<1x8x512xbf16>
      tpu.vector_store %arg7[%18, %c0_8, %19], %22 {strides = array<i32>} : memref<2x8x2048xbf16, #tpu.memory_space<vmem>>, vector<1x8x512xbf16>,
      %c0_9 = arith.constant 0 : index
      %c0_10 = arith.constant 0 : index
      %23 = vector.load %arg6[%c0_9, %c0_10] : memref<8x512xf32, #tpu.memory_space<vmem>>, vector<8x512xf32>
      tpu.vector_store %arg6[%c0_9, %c0_10], %16 {strides = array<i32>} : memref<8x512xf32, #tpu.memory_space<vmem>>, vector<8x512xf32>,
    } else {
    }
    %c0_i32_3 = arith.constant 0 : i32
    %8 = arith.cmpi sgt, %arg0, %c0_i32_3 : i32
    %9 = arith.extui %8 : i1 to i32
    %c0_i32_4 = arith.constant 0 : i32
    %10 = arith.cmpi ne, %9, %c0_i32_4 : i32
    scf.if %10 {
      %c1_i32 = arith.constant 1 : i32
      %11 = arith.addi %arg0, %c1_i32 : i32
      %c2_i32_5 = arith.constant 2 : i32
      %12 = arith.remsi %11, %c2_i32_5 : i32
      %13 = arith.index_cast %12 : i32 to index
      %c0_6 = arith.constant 0 : index
      %c0_7 = arith.constant 0 : index
      %14 = vector.load %arg7[%13, %c0_6, %c0_7] : memref<2x8x2048xbf16, #tpu.memory_space<vmem>>, vector<1x8x2048xbf16>
      %15 = vector.shape_cast %14 : vector<1x8x2048xbf16> to vector<8x2048xbf16>
      %c0_8 = arith.constant 0 : index
      %c0_9 = arith.constant 0 : index
      %c0_10 = arith.constant 0 : index
      %16 = vector.load %arg4[%c0_8, %c0_9, %c0_10] : memref<1x2048x512xbf16, #tpu.memory_space<vmem>>, vector<1x2048x512xbf16>
      %17 = vector.shape_cast %16 : vector<1x2048x512xbf16> to vector<2048x512xbf16>
      %cst = arith.constant dense<0.000000e+00> : vector<8x512xf32>
      %18 = tpu.matmul %15, %17, %cst {dimension_numbers = #tpu.dot_dimension_numbers<[1], [0], [0], [1], [0, 0, 1, 1], [], []>} : vector<8x2048xbf16>, vector<2048x512xbf16>, vector<8x512xf32> -> vector<8x512xf32>
      %19 = vector.broadcast %4 : vector<1x512xf32> to vector<8x512xf32>
      %20 = arith.addf %18, %19 : vector<8x512xf32>
      %21 = arith.truncf %20 : vector<8x512xf32> to vector<8x512xbf16>
      %22 = arith.index_cast %2 : i32 to index
      %c0_11 = arith.constant 0 : index
      %23 = arith.index_cast %1 : i32 to index
      %24 = vector.load %arg7[%22, %c0_11, %23] : memref<2x8x2048xbf16, #tpu.memory_space<vmem>>, vector<1x8x512xbf16>
      %25 = vector.shape_cast %24 : vector<1x8x512xbf16> to vector<8x512xbf16>
      %26 = vector.shape_cast %21 : vector<8x512xbf16> to vector<1x8x512xbf16>
      tpu.vector_store %arg7[%22, %c0_11, %23], %26 {strides = array<i32>} : memref<2x8x2048xbf16, #tpu.memory_space<vmem>>, vector<1x8x512xbf16>,
      %c0_12 = arith.constant 0 : index
      %c0_13 = arith.constant 0 : index
      %27 = vector.load %arg6[%c0_12, %c0_13] : memref<8x512xf32, #tpu.memory_space<vmem>>, vector<8x512xf32>
      tpu.vector_store %arg6[%c0_12, %c0_13], %20 {strides = array<i32>} : memref<8x512xf32, #tpu.memory_space<vmem>>, vector<8x512xf32>,
    } else {
    }
    return
  }
  func.func @transform_0(%arg0: i32, %arg1: i32) -> (i32, i32) {
    %c0_i32 = arith.constant 0 : i32
    %c0_i32_0 = arith.constant 0 : i32
    %c0_i32_1 = arith.constant 0 : i32
    return %c0_i32, %c0_i32_0 : i32, i32
  }
  func.func @transform_1(%arg0: i32, %arg1: i32) -> (i32, i32) {
    %c0_i32 = arith.constant 0 : i32
    %c0_i32_0 = arith.constant 0 : i32
    %c0_i32_1 = arith.constant 0 : i32
    return %c0_i32, %c0_i32_0 : i32, i32
  }
  func.func @transform_2(%arg0: i32, %arg1: i32) -> (i32, i32, i32) {
    %c1_i32 = arith.constant 1 : i32
    %0 = arith.subi %arg0, %c1_i32 : i32
    %c0_i32 = arith.constant 0 : i32
    %1 = arith.maxsi %0, %c0_i32 : i32
    %c0_i32_0 = arith.constant 0 : i32
    %2 = arith.cmpi sgt, %arg0, %c0_i32_0 : i32
    %c0_i32_1 = arith.constant 0 : i32
    %3 = arith.select %2, %arg1, %c0_i32_1 : i32
    %c0_i32_2 = arith.constant 0 : i32
    %c0_i32_3 = arith.constant 0 : i32
    return %1, %c0_i32_2, %3 : i32, i32, i32
  }
  func.func @transform_3(%arg0: i32, %arg1: i32) -> (i32, i32, i32) {
    %c0_i32 = arith.constant 0 : i32
    %c0_i32_0 = arith.constant 0 : i32
    return %arg0, %c0_i32, %arg1 : i32, i32, i32
  }
  func.func @transform_4(%arg0: i32, %arg1: i32) -> (i32, i32) {
    %c0_i32 = arith.constant 0 : i32
    %c0_i32_0 = arith.constant 0 : i32
    return %c0_i32, %arg1 : i32, i32
  }
}

</mosaic_0001>

<bundles_post_ra>
// kernel: generator_forward.1
= control target key start
LH: loop header
LB: loop body
LE: loop exit
PB: predicated region body
PF: predicated region fallthrough
CT: control target
= control target key end

     0   :  { %s7359_s0 = inlined_call_operand.vmem [shape: bf16[8,128], index: 0, kind: input, shape index: {}]   ;;  %s7360_s1 = inlined_call_operand.hbm [shape: bf16[128,2048], index: 1, kind: input, shape index: {}]   ;;  %s7361_s2 = inlined_call_operand.hbm [shape: bf16[7,2048,2048], index: 2, kind: input, shape index: {}]   ;;  %s7362_s3 = inlined_call_operand.hbm [shape: f32[8,1,2048], index: 3, kind: input, shape index: {}]   ;;  %s7363_s4 = inlined_call_operand.vmem [shape: f32[8,2048], index: 4, kind: output, shape index: {}]  }
   0x1   :  { %7374 = sst [smem:[#allocation15_spill]] %s7359_s0 }
   0x2   :  { %7375 = sst [smem:[#allocation16_spill]] %s7362_s3 }
   0x3   :  { %7376 = sst [smem:[#allocation17_spill]] %s7363_s4 }
   0x4   :  { %9 = vsyncpa [#allocation4], 0 }
   0x5   :  { %10 = vsyncpa [#allocation6], 0 }
   0x6   :  { %12 = vsyncpa [#allocation6 + $0x1], 0  ;;  %s6420_s15 = smov 0   ;;  %s6422_s16 = smov 0  }
   0x7   :  { %s6424_s17 = smov 0   ;;  %s6426_s18 = smov 0  }
   0x8   :  { %s6428_s19 = smov 0   ;;  %s6430_s20 = smov 0  }
   0x9   :  { %s6432_s21 = smov 0   ;;  %s6434_s22 = smov 0  }
   0xa   :  { %s6436_s23 = smov 0   ;;  %s6438_s24 = smov 0  }
   0xb   :  { %s6440_s25 = smov 0  }
   0xc LB: > { %7377 = sst [smem:[#allocation11_spill]] %s6345_s15  ;;  %s27_s26 = sadd.s32 1, %s6377_s23  ;;  %s6385_s25 = sphi %s6440_s25, %s18_s25   ;;  %s6381_s24 = sphi %s6438_s24, %s7417_s24   ;;  %s6377_s23 = sphi %s6436_s23, %s7416_s23   ;;  %s6373_s22 = sphi %s6434_s22, %s7415_s22   ;;  %s6369_s21 = sphi %s6432_s21, %s7414_s21   ;;  %s6365_s20 = sphi %s6430_s20, %s7413_s20   ;;  %s6361_s19 = sphi %s6428_s19, %s7412_s19   ;;  %s6357_s18 = sphi %s6426_s18, %s7411_s18   ;;  %s6353_s17 = sphi %s6424_s17, %s7410_s17   ;;  %s6349_s16 = sphi %s6422_s16, %s7409_s16   ;;  %s6345_s15 = sphi %s6420_s15, %s7408_s15  }
   0xd   : > { %7378 = sst [smem:[#allocation12_spill]] %s6349_s16  ;;  %s30_s27 = sadd.s32 1, %s6381_s24 }
   0xe   : > { %7379 = sst [smem:[#allocation13_spill]] %s6369_s21  ;;  %p28_p0 = scmp.ge.s32.totalorder %s27_s26, 4 }
   0xf   : > { %7380 = sst [smem:[#allocation14_spill]] %s6373_s22  ;;  %s4636_s28 = sadd.s32 4294967295, %s6381_s24 }
  0x10   : > { %p77_p1 = scmp.gt.s32.totalorder %s4636_s28, 0  ;;  %p79_p2 = scmp.gt.s32.totalorder %s6381_s24, 0 }
  0x11   : > { %s7419_s26 = smov (%p28_p0, %s27_s26), 0  ;;  %s7421_s27 = smov (!%p28_p0, %s30_s27), %s6381_s24 }
  0x12   : > { %s7423_s28 = smov (!%p77_p1, %s4636_s28), 0  ;;  %p32_p3 = scmp.ge.s32.totalorder %s7421_s27, 8 }
  0x13   : > { %s91_s29 = sadd.s32 1, %s6365_s20  ;;  %p98_p4 = scmp.ne.s32.totalorder %s6365_s20, %s6361_s19 }
  0x14   : > { %s80_s30 = scalar_select %p79_p2, %s6377_s23, 0 }
  0x15   : > { %s7425_s27 = smov (%p32_p3, %s7421_s27), 0  ;;  %p7369_p5 = scmp.eq.s32.totalorder %s6385_s25, 0 }
  0x16   : > { %s4637_s5 = sadd.s32 4294967295, %s7425_s27  ;;  %p84_p6 = scmp.gt.s32.totalorder %s7425_s27, 0 }
  0x17   : > { %p82_p7 = scmp.gt.s32.totalorder %s4637_s5, 0  ;;  %p6493_p8 = por %p7369_p5, %p98_p4 }
  0x18   : > { %s85_s7 = scalar_select %p84_p6, %s7419_s26, 0 }
  0x19   : > { %s7427_s5 = smov (!%p82_p7, %s4637_s5), 0  ;;  %p7368_p9 = scmp.lt.s32.totalorder %s6385_s25, 32 }
  0x1a   : > { %s87_s8 = ssub.s32 %s80_s30, %s85_s7  ;;  %s86_s9 = ssub.s32 %s7423_s28, %s7427_s5 }
  0x1b   : > { %s88_s10 = sor.u32 %s87_s8, %s86_s9  ;;  %s198_s11 = sand.u32 1, %s6385_s25  }
  0x1c   : > { %p89_p10 = scmp.eq.s32.totalorder %s88_s10, 0  ;;  %s200_s12 = sand.u32 1, %s6365_s20  }
  0x1d   : > { %s4641_s14 = sshll.u32 %s200_s12, 12  ;;  %s4643_s0 = sshll.u32 %s80_s30, 2 }
  0x1e   : > { %s6502_s13 = scalar_select %p89_p10, %s6365_s20, %s91_s29  }
  0x1f   : > { %s4644_s4 = sshll.u32 %s7423_s28, 12  ;;  %s202_s21 = scalar_lea.vmem [#allocation5], %s4641_s14 }
  0x20   : > { %s213_s22 = sadd.s32 %s4644_s4, %s4643_s0  ;;  %s216_s3 = sshll.u32 %s202_s21, 4  ;;  %s6504_s3 = int_to_ptr.vmem [resolvable:$true] %s216_s3 }
  0x21   : > { %s4645_s15 = sshll.u32 %s213_s22, 6  ;;  %p6515_p11 = pnand %p7368_p9, %p6493_p8 }
  0x22   : > { %s6509_s16 = scalar_lea.hbm %s7361_s2, %s4645_s15  ;;  %s6519_s0 = scalar_lea.sflag [#allocation6], %s198_s11 }
  0x23   : > { %s6199_s4 = scalar_lea.hbm %s6509_s16, 65536  ;;  %p6201_p13 = pneg %p6515_p11 }
  0x24   : > { %p6200_p12 = scmp.ne.s32.totalorder %s6509_s16, %s6199_s4  ;;  %s6204_s22 = scalar_lea.hbm %s7361_s2, 1835008 }
  0x25   : > { %p6205_p2 = scmp.lt.u32.totalorder %s6509_s16, %s7361_s2  ;;  %p6206_p3 = scmp.lt.u32.totalorder %s6204_s22, %s6199_s4 }
  0x26   : > { %p6202_p0 = pnand %p6201_p13, %p6200_p12  ;;  %p6208_p6 = scmp.lt.u32.totalorder %s6199_s4, %s6509_s16 }
  0x27   : > { %p6207_p4 = por %p6206_p3, %p6205_p2 }
  0x28   : > { %p6203_p1 = pneg %p6202_p0 }
  0x29   : > { %p6209_p7 = por %p6208_p6, %p6207_p4 }
  0x2b   : > { %p6210_p8 = pnand %p6209_p7, %p6203_p1 }
  0x2d   : > { %6213 = shalt.err (!%p6210_p8)
}
  0x2e   : > { %s6214_s6 = scalar_lea.vmem %s6504_s3, 65536  ;;  %s6387_s8 = smov [#allocation5]  }
  0x2f   : > { %p6215_p10 = scmp.ne.s32.totalorder %s6504_s3, %s6214_s6  ;;  %s6219_s9 = sshll.u32 %s6387_s8, 4  ;;  %s6220_s9 = int_to_ptr.vmem [resolvable:$false] %s6219_s9 }
  0x30   : > { %s6221_s10 = scalar_lea.vmem %s6220_s9, 131072  ;;  %p6222_p9 = scmp.lt.s32.totalorder %s6504_s3, %s6220_s9 }
  0x31   : > { %p6217_p12 = pnand %p6215_p10, %p6201_p13  ;;  %p6223_p2 = scmp.lt.s32.totalorder %s6221_s10, %s6214_s6 }
  0x33   : > { %p6218_p0 = pneg %p6217_p12  ;;  %p6224_p3 = por %p6223_p2, %p6222_p9 }
  0x35   : > { %p6225_p4 = pnand %p6224_p3, %p6218_p0 }
  0x37   : > { %6228 = shalt.err (!%p6225_p4)
}
  0x38   : > { %s6388_s11 = smov 1024   ;;  %s6389_s12 = smov 256  }
  0x39   : > { %s6390_s14 = smov 16   ;;  %s4634_s7 = sadd.s32 4294967295, %s6385_s25  }
  0x3a   : > { %5314 = dma.hbm_to_vmem [thread:$0]  (!%p6515_p11), %s6509_s16, 65536, %s6504_s3, %s6519_s0, %s6388_s11, %s6389_s12, %s6390_s14  }
  0x3b   : > { %p104_p9 = scmp.ne.s32.totalorder %s6361_s19, %s6357_s18  ;;  %p6553_p13 = scmp.eq.s32.totalorder %s4634_s7, 0 }
  0x3c   : > { %p4638_p1 = scmp.ge.s32.totalorder %s6385_s25, 1  ;;  %p169_p6 = scmp.lt.s32.totalorder %s6385_s25, 33 }
  0x3d   : > { %s7383_s5 = scalar_select %p6553_p13, 1, 0 }
  0x3e   : > { %p6561_p7 = por %p6553_p13, %p104_p9  ;;  %p6565_p8 = pnand %p4638_p1, %p169_p6 }
  0x3f   : > { %s6391_s3 = smov [#allocation3]   ;;  %s6229_s22 = scalar_lea.hbm %s7360_s1, 16384 }
  0x40   : > { %s7384_s4 = scalar_select %p6561_p7, 1, 0 }
  0x41   : > { %s7385_s29 = scalar_select %p6565_p8, 1, 0 }
  0x42   : > { %s184_s16 = sshll.u32 %s6391_s3, 4  ;;  %p5307_p11 = pneg %p6565_p8  ;;  %s185_s16 = int_to_ptr.vmem [resolvable:$true] %s184_s16 }
  0x43   : > { %p6230_p12 = scmp.ne.s32.totalorder %s7360_s1, %s6229_s22  ;;  %p6236_p4 = scmp.lt.u32.totalorder %s6229_s22, %s7360_s1 }
  0x44   : > { %p6573_p10 = pnand %p5307_p11, %p6553_p13 }
  0x46   : > { %p6231_p0 = pneg %p6573_p10 }
  0x48   : > { %p6232_p2 = pnand %p6231_p0, %p6230_p12 }
  0x4a   : > { %p6233_p3 = pneg %p6232_p2 }
  0x4c   : > { %p6238_p9 = pnand %p6236_p4, %p6233_p3 }
  0x4e   : > { %6241 = shalt.err (!%p6238_p9)
}
  0x4f   : > { %s6242_s9 = scalar_lea.vmem %s185_s16, 16384  ;;  %p6250_p5 = scmp.lt.s32.totalorder %s185_s16, %s185_s16 }
  0x50   : > { %p6243_p1 = scmp.ne.s32.totalorder %s185_s16, %s6242_s9  ;;  %p6251_p7 = scmp.lt.s32.totalorder %s6242_s9, %s6242_s9 }
  0x52   : > { %p6245_p6 = pnand %p6243_p1, %p6231_p0  ;;  %p6252_p8 = por %p6251_p7, %p6250_p5 }
  0x54   : > { %p6246_p11 = pneg %p6245_p6 }
  0x56   : > { %p6253_p13 = pnand %p6252_p8, %p6246_p11 }
  0x58   : > { %6256 = shalt.err (!%p6253_p13)
}
  0x59   : > { %s6392_s10 = smov 64   ;;  %s7387_s3 = sld [smem:[#allocation12_spill]] }
  0x5a   : > { %s7388_s15 = sld [smem:[#allocation11_spill]]  ;;  %s114_s18 = ssub.s32 %s6381_s24, %s7425_s27 }
  0x5b   : > { %5310 = dma.hbm_to_vmem [thread:$0]  (!%p6573_p10), %s7360_s1, 16384, %s185_s16, [#allocation4], %s6388_s11, %s6388_s11, %s6392_s10  }
  0x5c   : > { %s115_s21 = ssub.s32 %s6377_s23, %s7419_s26  ;;  %s119_s28 = sadd.s32 1, %s6353_s17 }
  0x5d   : > { %s116_s22 = sor.u32 %s115_s21, %s114_s18  ;;  %s228_s30 = sand.u32 1, %s6353_s17  }
  0x5e   : > { %p117_p5 = scmp.eq.s32.totalorder %s116_s22, 0  ;;  %p7389_p8 = scmp.eq.s32.totalorder %s6385_s25, 0 }
  0x5f   : > { %p126_p13 = scmp.ne.s32.totalorder %s6353_s17, %s7387_s3  ;;  %p7390_p0 = scmp.ne.s32.totalorder %s7383_s5, 0 }
  0x60   : > { %p132_p7 = scmp.ne.s32.totalorder %s7387_s3, %s7388_s15  ;;  %s4646_s9 = sshll.u32 %s228_s30, 2 }
  0x61   : > { %s6606_s6 = scalar_select %p117_p5, %s6353_s17, %s119_s28  }
  0x62   : > { %p128_p12 = por %p126_p13, %p7389_p8  ;;  %p6612_p2 = por %p132_p7, %p7390_p0 }
  0x63   : > { %s4647_s11 = sshll.u32 %s6377_s23, 2  ;;  %s4648_s16 = sshll.u32 %s6381_s24, 4 }
  0x64   : > { %s236_s10 = sadd.s32 %s4648_s16, %s4647_s11  ;;  %s230_s12 = scalar_lea.vmem [#allocation7], %s4646_s9 }
  0x65   : > { %s240_s14 = sshll.u32 %s230_s12, 4  ;;  %s4649_s18 = sshll.u32 %s236_s10, 4  ;;  %s6618_s14 = int_to_ptr.vmem [resolvable:$true] %s240_s14 }
  0x66   : > { %s7392_s21 = sld [smem:[#allocation16_spill]]  ;;  %p7394_p10 = scmp.lt.s32.totalorder %s6385_s25, 32 }
  0x68   : > { %p6627_p3 = pnand %p7394_p10, %p128_p12 }
  0x6a   : > { %p6259_p9 = pneg %p6627_p3 }
  0x6c   : > { %s7393_s28 = smov %s7392_s21  ;;  %s6623_s22 = scalar_lea.hbm %s7392_s21, %s4649_s18 }
  0x6d   : > { %s6257_s9 = scalar_lea.hbm %s6623_s22, 64  ;;  %s6262_s10 = scalar_lea.hbm %s7393_s28, 2048 }
  0x6e   : > { %p6258_p4 = scmp.ne.s32.totalorder %s6623_s22, %s6257_s9  ;;  %p6263_p11 = scmp.lt.u32.totalorder %s6623_s22, %s7393_s28 }
  0x6f   : > { %p6264_p5 = scmp.lt.u32.totalorder %s6262_s10, %s6257_s9  ;;  %p6266_p7 = scmp.lt.u32.totalorder %s6257_s9, %s6623_s22 }
  0x70   : > { %p6260_p1 = pnand %p6259_p9, %p6258_p4 }
  0x71   : > { %p6265_p13 = por %p6264_p5, %p6263_p11 }
  0x72   : > { %p6261_p6 = pneg %p6260_p1 }
  0x73   : > { %p6267_p8 = por %p6266_p7, %p6265_p13 }
  0x75   : > { %p6268_p12 = pnand %p6267_p8, %p6261_p6 }
  0x77   : > { %6271 = shalt.err (!%p6268_p12)
}
  0x78   : > { %s6272_s3 = scalar_lea.vmem %s6618_s14, 64  ;;  %s6393_s15 = smov [#allocation7]  }
  0x79   : > { %p6273_p0 = scmp.ne.s32.totalorder %s6618_s14, %s6272_s3  ;;  %s6277_s21 = sshll.u32 %s6393_s15, 4  ;;  %s6278_s21 = int_to_ptr.vmem [resolvable:$false] %s6277_s21 }
  0x7a   : > { %s6279_s11 = scalar_lea.vmem %s6278_s21, 128  ;;  %p6280_p1 = scmp.lt.s32.totalorder %s6618_s14, %s6278_s21 }
  0x7b   : > { %p6275_p10 = pnand %p6273_p0, %p6259_p9  ;;  %p6281_p11 = scmp.lt.s32.totalorder %s6279_s11, %s6272_s3 }
  0x7d   : > { %p6276_p4 = pneg %p6275_p10  ;;  %p6282_p5 = por %p6281_p11, %p6280_p1 }
  0x7f   : > { %p6283_p13 = pnand %p6282_p5, %p6276_p4 }
  0x81   : > { %6286 = shalt.err (!%p6283_p13)
}
  0x82   : > { %5317 = dma.hbm_to_vmem [thread:$0]  (!%p6627_p3), %s6623_s22, 64, %s6618_s14, %s6519_s0  }
  0x83   : > { %p7396_p6 = scmp.ne.s32.totalorder %s7385_s29, 0 }
  0x84   : > { %p7397_p9 = scmp.ne.s32.totalorder (!%p7396_p6), %s7383_s5, 0 }
  0x85   : > { %249 = sbr.rel (%p7396_p6) target bundleno = 1164 (0x48c), region = 36 }
  0x8c   : > { %6332 = dma.done.wait (%p7397_p9), [#allocation4], 16384  }
  0x8d   : > { %6334 = vsyncadd (%p7397_p9), [#allocation4], 4294950912  ;;  %s255_s9 = sand.u32 1, %s4634_s7   ;;  %s257_s16 = sand.u32 1, %s6361_s19  }
  0x8e   : > { %s4652_s30 = sshll.u32 %s257_s16, 12  ;;  %s256_s10 = scalar_lea.sflag [#allocation6], %s255_s9 }
  0x8f   : > { %s6666_s12 = scalar_lea.vmem [#allocation5], %s4652_s30  ;;  %p7398_p3 = scmp.ne.s32.totalorder %s7384_s4, 0 }
  0x91   : > { %6336 = dma.done.wait (%p7398_p3), %s256_s10, 65536  }
  0x92   : > { %6338 = vsyncadd (%p7398_p3), %s256_s10, 4294901760  ;;  %s7399_s0 = sld [smem:[#allocation12_spill]] }
  0x98   : > { %s266_s29 = sand.u32 1, %s7399_s0  }
  0x99   : > { %s4653_s5 = sshll.u32 %s266_s29, 2 }
  0x9a   : > { %s268_s14 = scalar_lea.vmem [#allocation7], %s4653_s5 }
  0x9b   : > { %6340 = dma.done.wait (%p6612_p2), %s256_s10, 64  }
  0x9c   : > { %6342 = vsyncadd (%p6612_p2), %s256_s10, 4294967232  ;;  %s7400_s7 = sld [smem:[#allocation13_spill]]  ;;  %s7401_s22 = sld [smem:[#allocation14_spill]]  ;;  %v6687_v0 = vld [vmem:[%s268_s14] sm:$0xf] }
  0x9d   : > { %s7402_s30 = sld [smem:[#allocation17_spill]] }
  0xa2   : > { %s4654_s18 = sshll.u32 %s7400_s7, 2  ;;  %s4656_s3 = sshll.u32 %s7400_s7, 9 }
  0xa3   : > { %p306_p7 = scmp.lt.s32.totalorder %s4654_s18, 15  ;;  %p313_p8 = scmp.lt.s32.totalorder %s7401_s22, 0 }
  0xa4   : > { %s314_s4 = ssub.s32 0, %s7401_s22  ;;  %p4658_p2 = scmp.ne.s32.totalorder %s7401_s22, 0 }
  0xa5   : > { %s7429_s18 = smov (!%p306_p7, %s4654_s18), 15  ;;  %s4657_s15 = smin.u32 %s7401_s22, %s314_s4  ;;  %v6394_v1 = vmov (!%p4658_p2), 0  }
  0xa6   : > { %s4655_s21 = sshll.u32 %s7429_s18, 3  ;;  %s316_s11 = sand.u32 1, %s4657_s15   ;;  %574 = vmatprep.mubr.bf16.mxu0 (!%p4658_p2), %v6394_v1  ;;  %615 = vmatprep.mubr.bf16.mxu1 (!%p4658_p2), %v6394_v1 }
  0xa7   : > { %s6685_s0 = scalar_lea.vmem %s7402_s30, %s4655_s21  ;;  %s317_s8 = ssub.s32 0, %s316_s11 }
  0xa8   : > { %s7431_s8 = smov (!%p313_p8, %s317_s8), %s316_s11  ;;  %323 = sbr.rel (%p4658_p2) target bundleno = 426 (0x1aa), region = 52 }
  0xa9   : > { %s6694_s29 = sshra.s32 (!%p4658_p2), %s4656_s3, 7  ;;  %s7404_s18 = sld [smem:[#allocation15_spill]] (!%p4658_p2) }
  0xaa   : > { %s4659_s5 = sshll.u32 (!%p4658_p2), %s6694_s29, 2  ;;  %s4694_s4 = sshll.u32 (!%p4658_p2), %s7431_s8, 4 }
  0xab   : > { %s6697_s7 = scalar_lea.vmem (!%p4658_p2), [#allocation3], %s4659_s5  ;;  %s641_s15 = sadd.s32 (!%p4658_p2), %s4694_s4, %s6694_s29 }
  0xac   : > { %v329_v2 = vld [vmem:[%s6697_s7] sm:$0xff] (!%p4658_p2)  ;;  %v330_v4 = vld [vmem:[%s6697_s7 + $0x8] sm:$0xff] (!%p4658_p2)  ;;  %s4695_s21 = sshll.u32 (!%p4658_p2), %s641_s15, 2 }
  0xad   : > { %v331_v3 = vld [vmem:[%s6697_s7 + $0x40] sm:$0xff] (!%p4658_p2)  ;;  %v332_v6 = vld [vmem:[%s6697_s7 + $0x48] sm:$0xff] (!%p4658_p2)  ;;  %s643_s11 = scalar_lea.vmem (!%p4658_p2), [#allocation2], %s4695_s21 }
  0xae   : > { %v4661_v5 = vcombine.high (!%p4658_p2), %v329_v2, %v331_v3  ;;  %v4660_v7 = vcombine.low (!%p4658_p2), %v329_v2, %v331_v3  ;;  %v333_v8 = vld [vmem:[%s6697_s7 + $0x80] sm:$0xff] (!%p4658_p2)  ;;  %v4663_v10 = vcombine.high (!%p4658_p2), %v330_v4, %v332_v6  ;;  %v4662_v11 = vcombine.low (!%p4658_p2), %v330_v4, %v332_v6  ;;  %v334_v13 = vld [vmem:[%s6697_s7 + $0x88] sm:$0xff] (!%p4658_p2) }
  0xaf   : > { %v335_v9 = vld [vmem:[%s6697_s7 + $0xc0] sm:$0xff]  ;;  %v336_v14 = vld [vmem:[%s6697_s7 + $0xc8] sm:$0xff]  ;;  %v362_v4 = vlaneseq }
  0xb0   : > { %v4665_v12 = vcombine.high %v333_v8, %v335_v9  ;;  %v337_v15 = vld [vmem:[%s6697_s7 + $0x100] sm:$0xff]  ;;  %542 = vmatprep.subr.bf16.mxu0 %v4661_v5  ;;  %v4667_v16 = vcombine.high %v334_v13, %v336_v14  ;;  %v338_v18 = vld [vmem:[%s6697_s7 + $0x108] sm:$0xff]  ;;  %583 = vmatprep.subr.bf16.mxu1 %v4663_v10  ;;  %v4664_v20 = vcombine.low %v333_v8, %v335_v9 }
  0xb1   : > { %v339_v17 = vld [vmem:[%s6697_s7 + $0x140] sm:$0xff]  ;;  %v340_v19 = vld [vmem:[%s6697_s7 + $0x148] sm:$0xff]  ;;  %543 = vmatpush1.bf16.msra.mxu0 %v4660_v7  ;;  %584 = vmatpush1.bf16.msra.mxu1 %v4662_v11  ;;  %v4666_v21 = vcombine.low %v334_v13, %v336_v14  ;;  %v363_v5 = vshrl.u32 %v362_v4, 7 }
  0xb2   : > { %544 = vmatprep.subr.bf16.mxu0 %v4665_v12  ;;  %v4669_v22 = vcombine.high %v337_v15, %v339_v17  ;;  %585 = vmatprep.subr.bf16.mxu1 %v4667_v16  ;;  %v4671_v23 = vcombine.high %v338_v18, %v340_v19  ;;  %v341_v24 = vld [vmem:[%s6697_s7 + $0x180] sm:$0xff]  ;;  %v342_v26 = vld [vmem:[%s6697_s7 + $0x188] sm:$0xff]  ;;  %v4668_v28 = vcombine.low %v337_v15, %v339_v17 }
  0xb3   : > { %v343_v25 = vld [vmem:[%s6697_s7 + $0x1c0] sm:$0xff]  ;;  %v344_v27 = vld [vmem:[%s6697_s7 + $0x1c8] sm:$0xff]  ;;  %v4670_v29 = vcombine.low %v338_v18, %v340_v19  ;;  %v364_v6 = vsub.s32 0, %v363_v5  ;;  %v372_v7 = vsub.s32 2, %v363_v5  ;;  %v368_v8 = vsub.s32 1, %v363_v5 }
  0xb4   : > { %v4673_v30 = vcombine.high %v341_v24, %v343_v25  ;;  %v4675_v31 = vcombine.high %v342_v26, %v344_v27  ;;  %v345_v32 = vld [vmem:[%s6697_s7 + $0x200] sm:$0xff]  ;;  %v346_v34 = vld [vmem:[%s6697_s7 + $0x208] sm:$0xff]  ;;  %v4672_v36 = vcombine.low %v341_v24, %v343_v25  ;;  %v4674_v37 = vcombine.low %v342_v26, %v344_v27 }
  0xb5   : > { %545 = vmatpush1.bf16.msra.mxu0 %v4664_v20  ;;  %586 = vmatpush1.bf16.msra.mxu1 %v4666_v21  ;;  %v347_v33 = vld [vmem:[%s6697_s7 + $0x240] sm:$0xff]  ;;  %v348_v35 = vld [vmem:[%s6697_s7 + $0x248] sm:$0xff]  ;;  %v376_v9 = vsub.s32 3, %v363_v5  ;;  %v365_v10 = vrot.slane %v6687_v0, %v364_v6  ;;  %v373_v11 = vrot.slane %v6687_v0, %v372_v7  ;;  %v369_v12 = vrot.slane %v6687_v0, %v368_v8 }
  0xb6   : > { %546 = vmatprep.subr.bf16.mxu0 %v4669_v22  ;;  %587 = vmatprep.subr.bf16.mxu1 %v4671_v23  ;;  %v4677_v38 = vcombine.high %v345_v32, %v347_v33  ;;  %v4679_v39 = vcombine.high %v346_v34, %v348_v35  ;;  %v349_v40 = vld [vmem:[%s6697_s7 + $0x280] sm:$0xff]  ;;  %v350_v42 = vld [vmem:[%s6697_s7 + $0x288] sm:$0xff]  ;;  %v4676_v44 = vcombine.low %v345_v32, %v347_v33 }
  0xb7   : > { %v351_v41 = vld [vmem:[%s6697_s7 + $0x2c0] sm:$0xff]  ;;  %v352_v43 = vld [vmem:[%s6697_s7 + $0x2c8] sm:$0xff]  ;;  %v4678_v45 = vcombine.low %v346_v34, %v348_v35  ;;  %v377_v13 = vrot.slane %v6687_v0, %v376_v9 }
  0xb8   : > { %v4681_v46 = vcombine.high %v349_v40, %v351_v41  ;;  %v4683_v47 = vcombine.high %v350_v42, %v352_v43  ;;  %v353_v48 = vld [vmem:[%s6697_s7 + $0x300] sm:$0xff]  ;;  %v354_v50 = vld [vmem:[%s6697_s7 + $0x308] sm:$0xff]  ;;  %v4680_v52 = vcombine.low %v349_v40, %v351_v41  ;;  %v4682_v53 = vcombine.low %v350_v42, %v352_v43 }
  0xb9   : > { %547 = vmatpush1.bf16.msra.mxu0 %v4668_v28  ;;  %588 = vmatpush1.bf16.msra.mxu1 %v4670_v29  ;;  %v355_v49 = vld [vmem:[%s6697_s7 + $0x340] sm:$0xff]  ;;  %v356_v51 = vld [vmem:[%s6697_s7 + $0x348] sm:$0xff] }
  0xba   : > { %548 = vmatprep.subr.bf16.mxu0 %v4673_v30  ;;  %589 = vmatprep.subr.bf16.mxu1 %v4675_v31  ;;  %v4685_v54 = vcombine.high %v353_v48, %v355_v49  ;;  %v4687_v55 = vcombine.high %v354_v50, %v356_v51  ;;  %v357_v56 = vld [vmem:[%s6697_s7 + $0x380] sm:$0xff]  ;;  %v358_v58 = vld [vmem:[%s6697_s7 + $0x388] sm:$0xff]  ;;  %v4684_v60 = vcombine.low %v353_v48, %v355_v49 }
  0xbb   : > { %v359_v57 = vld [vmem:[%s6697_s7 + $0x3c0] sm:$0xff]  ;;  %v360_v59 = vld [vmem:[%s6697_s7 + $0x3c8] sm:$0xff]  ;;  %v4686_v61 = vcombine.low %v354_v50, %v356_v51 }
  0xbc   : > { %v4689_v62 = vcombine.high %v357_v56, %v359_v57  ;;  %v4691_v63 = vcombine.high %v358_v58, %v360_v59  ;;  %v4688_v1 = vcombine.low %v357_v56, %v359_v57  ;;  %v4690_v2 = vcombine.low %v358_v58, %v360_v59  ;;  %v324_v3 = vld [vmem:[%s7404_s18] sm:$0xf] }
  0xbd   : > { %549 = vmatpush1.bf16.msra.mxu0 %v4672_v36  ;;  %590 = vmatpush1.bf16.msra.mxu1 %v4674_v37 }
  0xbe   : > { %550 = vmatprep.subr.bf16.mxu0 %v4677_v38  ;;  %591 = vmatprep.subr.bf16.mxu1 %v4679_v39 }
  0xc1   : > { %551 = vmatpush1.bf16.msra.mxu0 %v4676_v44  ;;  %592 = vmatpush1.bf16.msra.mxu1 %v4678_v45 }
  0xc2   : > { %552 = vmatprep.subr.bf16.mxu0 %v4681_v46  ;;  %593 = vmatprep.subr.bf16.mxu1 %v4683_v47 }
  0xc5   : > { %553 = vmatpush1.bf16.msra.mxu0 %v4680_v52  ;;  %594 = vmatpush1.bf16.msra.mxu1 %v4682_v53 }
  0xc6   : > { %554 = vmatprep.subr.bf16.mxu0 %v4685_v54  ;;  %595 = vmatprep.subr.bf16.mxu1 %v4687_v55 }
  0xc9   : > { %555 = vmatpush1.bf16.msra.mxu0 %v4684_v60  ;;  %596 = vmatpush1.bf16.msra.mxu1 %v4686_v61 }
  0xca   : > { %556 = vmatprep.subr.bf16.mxu0 %v4689_v62  ;;  %597 = vmatprep.subr.bf16.mxu1 %v4691_v63 }
  0xcd   : > { %557 = vmatpush1.bf16.msra.mxu0 %v4688_v1  ;;  %598 = vmatpush1.bf16.msra.mxu1 %v4690_v2 }
  0xd0   : > { %575 = vmatmul.mubr.bf16.vlgmr.msra.gmra.mrb[0].mxu0 %v324_v3  ;;  %616 = vmatmul.mubr.bf16.vlgmr.msra.gmra.mrb[0].mxu1 %v324_v3 }
 0x1a3   : > { %v576_v14 = vpop.f32.mrb[0].mxu0  ;;  %v617_v16 = vpop.f32.mrb[0].mxu1 }
 0x1a4   : > { %v577_v15 = vadd.f32 %v576_v14, %v365_v10  ;;  %v578_v17 = vpop.f32.mrb[1].mxu0  ;;  %v618_v18 = vadd.f32 %v617_v16, %v373_v11  ;;  %v619_v20 = vpop.f32.mrb[1].mxu1 }
 0x1a5   : > { %v579_v19 = vadd.f32 %v578_v17, %v369_v12  ;;  %v580_v21 = vpop.f32.mrb[2].mxu0  ;;  %v620_v22 = vadd.f32 %v619_v20, %v377_v13  ;;  %v621_v23 = vpop.f32.mrb[2].mxu1 }
 0x1a6   : > { %646 = vst [vmem:[%s6685_s0] sm:$0xff] %v577_v15  ;;  %v581_v24 = vpop.f32.mrb[3].mxu0  ;;  %648 = vst [vmem:[%s6685_s0 + $0x10] sm:$0xff] %v618_v18  ;;  %v622_v26 = vpop.f32.mrb[3].mxu1 }
 0x1a7   : > { %v5234_v25 = vpack.c.bf16 %v579_v19, %v577_v15  ;;  %647 = vst [vmem:[%s6685_s0 + $0x8] sm:$0xff] %v579_v19  ;;  %v5235_v27 = vpack.c.bf16 %v620_v22, %v618_v18  ;;  %649 = vst [vmem:[%s6685_s0 + $0x18] sm:$0xff] %v620_v22 }
 0x1a9   : > { %644 = vst [vmem:[%s643_s11] sm:$0xff] %v5234_v25  ;;  %645 = vst [vmem:[%s643_s11 + $0x8] sm:$0xff] %v5235_v27 }
 0x1aa PF: > { %s7405_s9 = sld [smem:[#allocation14_spill]] }
 0x1b0   : > { %p4696_p12 = scmp.le.s32.totalorder %s7405_s9, 0 }
 0x1b1   : > { %v5415_v28 = vld [vmem:[%s6666_s12 + $0x4] ss:$16 sps:$4 sm:$0xff] (!%p4696_p12)   ;;  %v5417_v29 = vld [vmem:[%s6666_s12 + $0xc] ss:$16 sps:$4 sm:$0xff] (!%p4696_p12)   ;;  %v5419_v30 = vld [vmem:[%s6666_s12] ss:$16 sps:$4 sm:$0xff] (!%p4696_p12)  }
 0x1b2   : > { %653 = sbr.rel (%p4696_p12) target bundleno = 1164 (0x48c), region = 56  ;;  %3821 = vmatprep.subr.bf16.mxu0 (!%p4696_p12), %v5415_v28  ;;  %v5420_v31 = vld [vmem:[%s6666_s12 + $0x8] ss:$16 sps:$4 sm:$0xff] (!%p4696_p12)   ;;  %4149 = vmatprep.subr.bf16.mxu1 (!%p4696_p12), %v5417_v29  ;;  %v5421_v32 = vld [vmem:[%s6666_s12 + $0x24] ss:$16 sps:$4 sm:$0xff] (!%p4696_p12)   ;;  %s7406_s16 = sld [smem:[#allocation14_spill]] (!%p4696_p12) }
 0x1b3   : > { %3822 = vmatpush1.bf16.msra.mxu0 (!%p4696_p12), %v5419_v30  ;;  %4150 = vmatpush1.bf16.msra.mxu1 (!%p4696_p12), %v5420_v31  ;;  %v5423_v33 = vld [vmem:[%s6666_s12 + $0x2c] ss:$16 sps:$4 sm:$0xff] (!%p4696_p12)   ;;  %v5425_v34 = vld [vmem:[%s6666_s12 + $0x20] ss:$16 sps:$4 sm:$0xff] (!%p4696_p12)   ;;  %v5426_v35 = vld [vmem:[%s6666_s12 + $0x28] ss:$16 sps:$4 sm:$0xff] (!%p4696_p12)  }
 0x1b4   : > { %3823 = vmatprep.subr.bf16.mxu0 (!%p4696_p12), %v5421_v32  ;;  %4151 = vmatprep.subr.bf16.mxu1 (!%p4696_p12), %v5423_v33  ;;  %v5427_v36 = vld [vmem:[%s6666_s12 + $0x44] ss:$16 sps:$4 sm:$0xff] (!%p4696_p12)   ;;  %v5429_v37 = vld [vmem:[%s6666_s12 + $0x4c] ss:$16 sps:$4 sm:$0xff] (!%p4696_p12)   ;;  %v5431_v38 = vld [vmem:[%s6666_s12 + $0x40] ss:$16 sps:$4 sm:$0xff] (!%p4696_p12)  }
 0x1b5   : > { %v5432_v39 = vld [vmem:[%s6666_s12 + $0x48] ss:$16 sps:$4 sm:$0xff] (!%p4696_p12)   ;;  %v5433_v40 = vld [vmem:[%s6666_s12 + $0x64] ss:$16 sps:$4 sm:$0xff] (!%p4696_p12)   ;;  %v5435_v41 = vld [vmem:[%s6666_s12 + $0x6c] ss:$16 sps:$4 sm:$0xff] (!%p4696_p12)  }
 0x1b6   : > { %v5437_v42 = vld [vmem:[%s6666_s12 + $0x60] ss:$16 sps:$4 sm:$0xff] (!%p4696_p12)   ;;  %v5438_v43 = vld [vmem:[%s6666_s12 + $0x68] ss:$16 sps:$4 sm:$0xff] (!%p4696_p12)   ;;  %v5439_v44 = vld [vmem:[%s6666_s12 + $0x84] ss:$16 sps:$4 sm:$0xff] (!%p4696_p12)  }
 0x1b7   : > { %3824 = vmatpush1.bf16.msra.mxu0 (!%p4696_p12), %v5425_v34  ;;  %4152 = vmatpush1.bf16.msra.mxu1 (!%p4696_p12), %v5426_v35  ;;  %v5441_v45 = vld [vmem:[%s6666_s12 + $0x8c] ss:$16 sps:$4 sm:$0xff] (!%p4696_p12)   ;;  %v5443_v46 = vld [vmem:[%s6666_s12 + $0x80] ss:$16 sps:$4 sm:$0xff] (!%p4696_p12)   ;;  %v5444_v47 = vld [vmem:[%s6666_s12 + $0x88] ss:$16 sps:$4 sm:$0xff] (!%p4696_p12)  }
 0x1b8   : > { %3825 = vmatprep.subr.bf16.mxu0 (!%p4696_p12), %v5427_v36  ;;  %4153 = vmatprep.subr.bf16.mxu1 (!%p4696_p12), %v5429_v37  ;;  %v5445_v48 = vld [vmem:[%s6666_s12 + $0xa4] ss:$16 sps:$4 sm:$0xff] (!%p4696_p12)   ;;  %v5447_v49 = vld [vmem:[%s6666_s12 + $0xac] ss:$16 sps:$4 sm:$0xff] (!%p4696_p12)   ;;  %s6768_s30 = sadd.s32 (!%p4696_p12), 1, %s7406_s16  ;;  %s4493_s4 = sshra.s32 (!%p4696_p12), %s4656_s3, 7 }
 0x1b9   : > { %v5449_v50 = vld [vmem:[%s6666_s12 + $0xa0] ss:$16 sps:$4 sm:$0xff]   ;;  %v5450_v51 = vld [vmem:[%s6666_s12 + $0xa8] ss:$16 sps:$4 sm:$0xff]   ;;  %v5451_v52 = vld [vmem:[%s6666_s12 + $0xc4] ss:$16 sps:$4 sm:$0xff]  }
 0x1ba   : > { %s656_s10 = ssub.s32 0, %s6768_s30  ;;  %v5453_v53 = vld [vmem:[%s6666_s12 + $0xcc] ss:$16 sps:$4 sm:$0xff]   ;;  %v5455_v54 = vld [vmem:[%s6666_s12 + $0xc0] ss:$16 sps:$4 sm:$0xff]   ;;  %p655_p0 = scmp.lt.s32.totalorder %s6768_s30, 0 }
 0x1bb   : > { %3826 = vmatpush1.bf16.msra.mxu0 %v5431_v38  ;;  %4154 = vmatpush1.bf16.msra.mxu1 %v5432_v39  ;;  %v5456_v55 = vld [vmem:[%s6666_s12 + $0xc8] ss:$16 sps:$4 sm:$0xff]   ;;  %s4697_s29 = smin.u32 %s656_s10, %s6768_s30  ;;  %v5457_v56 = vld [vmem:[%s6666_s12 + $0xe4] ss:$16 sps:$4 sm:$0xff]   ;;  %v5459_v57 = vld [vmem:[%s6666_s12 + $0xec] ss:$16 sps:$4 sm:$0xff]  }
 0x1bc   : > { %3827 = vmatprep.subr.bf16.mxu0 %v5433_v40  ;;  %4155 = vmatprep.subr.bf16.mxu1 %v5435_v41  ;;  %s658_s5 = sand.u32 1, %s4697_s29   ;;  %v5461_v58 = vld [vmem:[%s6666_s12 + $0xe0] ss:$16 sps:$4 sm:$0xff]   ;;  %v5462_v59 = vld [vmem:[%s6666_s12 + $0xe8] ss:$16 sps:$4 sm:$0xff]   ;;  %s5230_s15 = sshll.u32 %s7431_s8, 4 }
 0x1bd   : > { %v5463_v60 = vld [vmem:[%s6666_s12 + $0x104] ss:$16 sps:$4 sm:$0xff]   ;;  %v5465_v61 = vld [vmem:[%s6666_s12 + $0x10c] ss:$16 sps:$4 sm:$0xff]   ;;  %s659_s7 = ssub.s32 0, %s658_s5 }
 0x1be   : > { %v5467_v62 = vld [vmem:[%s6666_s12 + $0x100] ss:$16 sps:$4 sm:$0xff]   ;;  %v5468_v63 = vld [vmem:[%s6666_s12 + $0x108] ss:$16 sps:$4 sm:$0xff]   ;;  %v5469_v1 = vld [vmem:[%s6666_s12 + $0x124] ss:$16 sps:$4 sm:$0xff]   ;;  %s7433_s7 = smov (!%p655_p0, %s659_s7), %s658_s5 }
 0x1bf   : > { %3828 = vmatpush1.bf16.msra.mxu0 %v5437_v42  ;;  %4156 = vmatpush1.bf16.msra.mxu1 %v5438_v43  ;;  %v5471_v2 = vld [vmem:[%s6666_s12 + $0x12c] ss:$16 sps:$4 sm:$0xff]   ;;  %v5473_v3 = vld [vmem:[%s6666_s12 + $0x120] ss:$16 sps:$4 sm:$0xff]   ;;  %v5474_v4 = vld [vmem:[%s6666_s12 + $0x128] ss:$16 sps:$4 sm:$0xff]  }
 0x1c0   : > { %3829 = vmatprep.subr.bf16.mxu0 %v5439_v44  ;;  %4157 = vmatprep.subr.bf16.mxu1 %v5441_v45  ;;  %v5475_v5 = vld [vmem:[%s6666_s12 + $0x144] ss:$16 sps:$4 sm:$0xff]   ;;  %s5236_s14 = sshll.u32 %s7433_s7, 6  ;;  %v5477_v6 = vld [vmem:[%s6666_s12 + $0x14c] ss:$16 sps:$4 sm:$0xff]  }
 0x1c1   : > { %v5479_v7 = vld [vmem:[%s6666_s12 + $0x140] ss:$16 sps:$4 sm:$0xff]   ;;  %v5480_v8 = vld [vmem:[%s6666_s12 + $0x148] ss:$16 sps:$4 sm:$0xff]   ;;  %v5481_v9 = vld [vmem:[%s6666_s12 + $0x164] ss:$16 sps:$4 sm:$0xff]  }
 0x1c2   : > { %v5483_v10 = vld [vmem:[%s6666_s12 + $0x16c] ss:$16 sps:$4 sm:$0xff]   ;;  %s6797_s22 = scalar_lea.vmem [#allocation2], %s5236_s14  ;;  %v5485_v12 = vld [vmem:[%s6666_s12 + $0x160] ss:$16 sps:$4 sm:$0xff]  }
 0x1c3   : > { %3830 = vmatpush1.bf16.msra.mxu0 %v5443_v46  ;;  %4158 = vmatpush1.bf16.msra.mxu1 %v5444_v47  ;;  %v664_v11 = vld [vmem:[%s6797_s22] sm:$0xff]  ;;  %v5486_v14 = vld [vmem:[%s6666_s12 + $0x168] ss:$16 sps:$4 sm:$0xff]   ;;  %v5489_v16 = vld [vmem:[%s6666_s12 + $0x18c] ss:$16 sps:$4 sm:$0xff]  }
 0x1c4   : > { %3831 = vmatprep.subr.bf16.mxu0 %v5445_v48  ;;  %4159 = vmatprep.subr.bf16.mxu1 %v5447_v49  ;;  %v4701_v13 = vcombine.high %v664_v11, %v664_v11  ;;  %v5487_v15 = vld [vmem:[%s6666_s12 + $0x184] ss:$16 sps:$4 sm:$0xff]   ;;  %v5491_v17 = vld [vmem:[%s6666_s12 + $0x180] ss:$16 sps:$4 sm:$0xff]   ;;  %v5492_v18 = vld [vmem:[%s6666_s12 + $0x188] ss:$16 sps:$4 sm:$0xff]   ;;  %v4700_v34 = vcombine.low %v664_v11, %v664_v11 }
 0x1c5   : > { %v5493_v19 = vld [vmem:[%s6666_s12 + $0x1a4] ss:$16 sps:$4 sm:$0xff]   ;;  %v5495_v20 = vld [vmem:[%s6666_s12 + $0x1ac] ss:$16 sps:$4 sm:$0xff]   ;;  %v5497_v21 = vld [vmem:[%s6666_s12 + $0x1a0] ss:$16 sps:$4 sm:$0xff]  }
 0x1c6   : > { %3853 = vmatprep.mubr.bf16.mxu0 %v4701_v13  ;;  %4181 = vmatprep.mubr.bf16.mxu1 %v4701_v13  ;;  %v5498_v22 = vld [vmem:[%s6666_s12 + $0x1a8] ss:$16 sps:$4 sm:$0xff]   ;;  %v5499_v23 = vld [vmem:[%s6666_s12 + $0x1c4] ss:$16 sps:$4 sm:$0xff]   ;;  %v5501_v24 = vld [vmem:[%s6666_s12 + $0x1cc] ss:$16 sps:$4 sm:$0xff]  }
 0x1c7   : > { %3832 = vmatpush1.bf16.msra.mxu0 %v5449_v50  ;;  %4160 = vmatpush1.bf16.msra.mxu1 %v5450_v51  ;;  %v5503_v25 = vld [vmem:[%s6666_s12 + $0x1c0] ss:$16 sps:$4 sm:$0xff]   ;;  %v5504_v26 = vld [vmem:[%s6666_s12 + $0x1c8] ss:$16 sps:$4 sm:$0xff]   ;;  %v5505_v27 = vld [vmem:[%s6666_s12 + $0x1e4] ss:$16 sps:$4 sm:$0xff]  }
 0x1c8   : > { %3833 = vmatprep.subr.bf16.mxu0 %v5451_v52  ;;  %4161 = vmatprep.subr.bf16.mxu1 %v5453_v53  ;;  %v5507_v28 = vld [vmem:[%s6666_s12 + $0x1ec] ss:$16 sps:$4 sm:$0xff]   ;;  %v5509_v29 = vld [vmem:[%s6666_s12 + $0x1e0] ss:$16 sps:$4 sm:$0xff]   ;;  %v5510_v30 = vld [vmem:[%s6666_s12 + $0x1e8] ss:$16 sps:$4 sm:$0xff]  }
 0x1c9   : > { %v5514_v31 = vld [vmem:[%s6666_s12 + $0x204] ss:$16 sps:$4 sm:$0xff]   ;;  %v5517_v32 = vld [vmem:[%s6666_s12 + $0x20c] ss:$16 sps:$4 sm:$0xff]   ;;  %v5512_v33 = vld [vmem:[%s6666_s12 + $0x200] ss:$16 sps:$4 sm:$0xff]  }
 0x1ca   : > { %v5515_v35 = vld [vmem:[%s6666_s12 + $0x208] ss:$16 sps:$4 sm:$0xff]   ;;  %v5521_v36 = vld [vmem:[%s6666_s12 + $0x224] ss:$16 sps:$4 sm:$0xff]   ;;  %v5524_v37 = vld [vmem:[%s6666_s12 + $0x22c] ss:$16 sps:$4 sm:$0xff]  }
 0x1cb   : > { %3834 = vmatpush1.bf16.msra.mxu0 %v5455_v54  ;;  %4162 = vmatpush1.bf16.msra.mxu1 %v5456_v55  ;;  %v5519_v38 = vld [vmem:[%s6666_s12 + $0x220] ss:$16 sps:$4 sm:$0xff]   ;;  %v5522_v39 = vld [vmem:[%s6666_s12 + $0x228] ss:$16 sps:$4 sm:$0xff]   ;;  %v5527_v40 = vld [vmem:[%s6666_s12 + $0x244] ss:$16 sps:$4 sm:$0xff]  }
 0x1cc   : > { %3835 = vmatprep.subr.bf16.mxu0 %v5457_v56  ;;  %4163 = vmatprep.subr.bf16.mxu1 %v5459_v57  ;;  %v5530_v41 = vld [vmem:[%s6666_s12 + $0x24c] ss:$16 sps:$4 sm:$0xff]   ;;  %v5525_v42 = vld [vmem:[%s6666_s12 + $0x240] ss:$16 sps:$4 sm:$0xff]   ;;  %v5528_v43 = vld [vmem:[%s6666_s12 + $0x248] ss:$16 sps:$4 sm:$0xff]  }
 0x1cd   : > { %v5533_v44 = vld [vmem:[%s6666_s12 + $0x264] ss:$16 sps:$4 sm:$0xff]   ;;  %v5536_v45 = vld [vmem:[%s6666_s12 + $0x26c] ss:$16 sps:$4 sm:$0xff]   ;;  %v5531_v46 = vld [vmem:[%s6666_s12 + $0x260] ss:$16 sps:$4 sm:$0xff]  }
 0x1ce   : > { %v5534_v47 = vld [vmem:[%s6666_s12 + $0x268] ss:$16 sps:$4 sm:$0xff]   ;;  %v5539_v48 = vld [vmem:[%s6666_s12 + $0x284] ss:$16 sps:$4 sm:$0xff]   ;;  %v5542_v49 = vld [vmem:[%s6666_s12 + $0x28c] ss:$16 sps:$4 sm:$0xff]  }
 0x1cf   : > { %3836 = vmatpush1.bf16.msra.mxu0 %v5461_v58  ;;  %4164 = vmatpush1.bf16.msra.mxu1 %v5462_v59  ;;  %v5537_v50 = vld [vmem:[%s6666_s12 + $0x280] ss:$16 sps:$4 sm:$0xff]   ;;  %v5540_v51 = vld [vmem:[%s6666_s12 + $0x288] ss:$16 sps:$4 sm:$0xff]   ;;  %v5545_v52 = vld [vmem:[%s6666_s12 + $0x2a4] ss:$16 sps:$4 sm:$0xff]  }
 0x1d0   : > { %3837 = vmatprep.subr.bf16.mxu0 %v5463_v60  ;;  %4165 = vmatprep.subr.bf16.mxu1 %v5465_v61  ;;  %v5548_v53 = vld [vmem:[%s6666_s12 + $0x2ac] ss:$16 sps:$4 sm:$0xff]   ;;  %v5543_v54 = vld [vmem:[%s6666_s12 + $0x2a0] ss:$16 sps:$4 sm:$0xff]   ;;  %v5546_v55 = vld [vmem:[%s6666_s12 + $0x2a8] ss:$16 sps:$4 sm:$0xff]  }
 0x1d1   : > { %v5551_v56 = vld [vmem:[%s6666_s12 + $0x2c4] ss:$16 sps:$4 sm:$0xff]   ;;  %v5554_v57 = vld [vmem:[%s6666_s12 + $0x2cc] ss:$16 sps:$4 sm:$0xff]   ;;  %v5549_v60 = vld [vmem:[%s6666_s12 + $0x2c0] ss:$16 sps:$4 sm:$0xff]  }
 0x1d2   : > { %v6845_v58 = vld [vmem:[%s6797_s22 + $0x8] sm:$0xff]  ;;  %v5575_v11 = vld [vmem:[%s6666_s12 + $0x344] ss:$16 sps:$4 sm:$0xff]   ;;  %v5573_v13 = vld [vmem:[%s6666_s12 + $0x340] ss:$16 sps:$4 sm:$0xff]  }
 0x1d3   : > { %3838 = vmatpush1.bf16.msra.mxu0 %v5467_v62  ;;  %4166 = vmatpush1.bf16.msra.mxu1 %v5468_v63  ;;  %v4703_v59 = vcombine.high %v6845_v58, %v6845_v58  ;;  %v5552_v61 = vld [vmem:[%s6666_s12 + $0x2c8] ss:$16 sps:$4 sm:$0xff]   ;;  %v5557_v62 = vld [vmem:[%s6666_s12 + $0x2e4] ss:$16 sps:$4 sm:$0xff]   ;;  %v5560_v63 = vld [vmem:[%s6666_s12 + $0x2ec] ss:$16 sps:$4 sm:$0xff]  }
 0x1d4   : > { %3839 = vmatprep.subr.bf16.mxu0 %v5469_v1  ;;  %4167 = vmatprep.subr.bf16.mxu1 %v5471_v2  ;;  %v5555_v1 = vld [vmem:[%s6666_s12 + $0x2e0] ss:$16 sps:$4 sm:$0xff]   ;;  %v5558_v2 = vld [vmem:[%s6666_s12 + $0x2e8] ss:$16 sps:$4 sm:$0xff]  }
 0x1d7   : > { %3840 = vmatpush1.bf16.msra.mxu0 %v5473_v3  ;;  %4168 = vmatpush1.bf16.msra.mxu1 %v5474_v4  ;;  %v5563_v3 = vld [vmem:[%s6666_s12 + $0x304] ss:$16 sps:$4 sm:$0xff]   ;;  %v5566_v4 = vld [vmem:[%s6666_s12 + $0x30c] ss:$16 sps:$4 sm:$0xff]  }
 0x1d8   : > { %3841 = vmatprep.subr.bf16.mxu0 %v5475_v5  ;;  %4169 = vmatprep.subr.bf16.mxu1 %v5477_v6  ;;  %v5561_v5 = vld [vmem:[%s6666_s12 + $0x300] ss:$16 sps:$4 sm:$0xff]   ;;  %v5564_v6 = vld [vmem:[%s6666_s12 + $0x308] ss:$16 sps:$4 sm:$0xff]  }
 0x1db   : > { %3842 = vmatpush1.bf16.msra.mxu0 %v5479_v7  ;;  %4170 = vmatpush1.bf16.msra.mxu1 %v5480_v8  ;;  %v5569_v7 = vld [vmem:[%s6666_s12 + $0x324] ss:$16 sps:$4 sm:$0xff]   ;;  %v5572_v8 = vld [vmem:[%s6666_s12 + $0x32c] ss:$16 sps:$4 sm:$0xff]  }
 0x1dc   : > { %3843 = vmatprep.subr.bf16.mxu0 %v5481_v9  ;;  %4171 = vmatprep.subr.bf16.mxu1 %v5483_v10  ;;  %v5567_v9 = vld [vmem:[%s6666_s12 + $0x320] ss:$16 sps:$4 sm:$0xff]   ;;  %v5570_v10 = vld [vmem:[%s6666_s12 + $0x328] ss:$16 sps:$4 sm:$0xff]  }
 0x1df   : > { %3844 = vmatpush1.bf16.msra.mxu0 %v5485_v12  ;;  %4172 = vmatpush1.bf16.msra.mxu1 %v5486_v14  ;;  %v5578_v12 = vld [vmem:[%s6666_s12 + $0x34c] ss:$16 sps:$4 sm:$0xff]   ;;  %v5576_v14 = vld [vmem:[%s6666_s12 + $0x348] ss:$16 sps:$4 sm:$0xff]  }
 0x1e0   : > { %3845 = vmatprep.subr.bf16.mxu0 %v5487_v15  ;;  %4173 = vmatprep.subr.bf16.mxu1 %v5489_v16  ;;  %v5581_v15 = vld [vmem:[%s6666_s12 + $0x364] ss:$16 sps:$4 sm:$0xff]   ;;  %v5584_v16 = vld [vmem:[%s6666_s12 + $0x36c] ss:$16 sps:$4 sm:$0xff]  }
 0x1e3   : > { %3846 = vmatpush1.bf16.msra.mxu0 %v5491_v17  ;;  %4174 = vmatpush1.bf16.msra.mxu1 %v5492_v18  ;;  %v5579_v17 = vld [vmem:[%s6666_s12 + $0x360] ss:$16 sps:$4 sm:$0xff]   ;;  %v5582_v18 = vld [vmem:[%s6666_s12 + $0x368] ss:$16 sps:$4 sm:$0xff]  }
 0x1e4   : > { %3847 = vmatprep.subr.bf16.mxu0 %v5493_v19  ;;  %4175 = vmatprep.subr.bf16.mxu1 %v5495_v20  ;;  %v5587_v19 = vld [vmem:[%s6666_s12 + $0x384] ss:$16 sps:$4 sm:$0xff]   ;;  %v5590_v20 = vld [vmem:[%s6666_s12 + $0x38c] ss:$16 sps:$4 sm:$0xff]  }
 0x1e7   : > { %3848 = vmatpush1.bf16.msra.mxu0 %v5497_v21  ;;  %4176 = vmatpush1.bf16.msra.mxu1 %v5498_v22  ;;  %v5585_v21 = vld [vmem:[%s6666_s12 + $0x380] ss:$16 sps:$4 sm:$0xff]   ;;  %v5588_v22 = vld [vmem:[%s6666_s12 + $0x388] ss:$16 sps:$4 sm:$0xff]  }
 0x1e8   : > { %3849 = vmatprep.subr.bf16.mxu0 %v5499_v23  ;;  %4177 = vmatprep.subr.bf16.mxu1 %v5501_v24  ;;  %v5593_v23 = vld [vmem:[%s6666_s12 + $0x3a4] ss:$16 sps:$4 sm:$0xff]   ;;  %v5596_v24 = vld [vmem:[%s6666_s12 + $0x3ac] ss:$16 sps:$4 sm:$0xff]  }
 0x1eb   : > { %3850 = vmatpush1.bf16.msra.mxu0 %v5503_v25  ;;  %4178 = vmatpush1.bf16.msra.mxu1 %v5504_v26  ;;  %v5591_v25 = vld [vmem:[%s6666_s12 + $0x3a0] ss:$16 sps:$4 sm:$0xff]   ;;  %v5594_v26 = vld [vmem:[%s6666_s12 + $0x3a8] ss:$16 sps:$4 sm:$0xff]  }
 0x1ec   : > { %3851 = vmatprep.subr.bf16.mxu0 %v5505_v27  ;;  %4179 = vmatprep.subr.bf16.mxu1 %v5507_v28  ;;  %v5599_v27 = vld [vmem:[%s6666_s12 + $0x3c4] ss:$16 sps:$4 sm:$0xff]   ;;  %v5602_v28 = vld [vmem:[%s6666_s12 + $0x3cc] ss:$16 sps:$4 sm:$0xff]  }
 0x1ef   : > { %3852 = vmatpush1.bf16.msra.mxu0 %v5509_v29  ;;  %4180 = vmatpush1.bf16.msra.mxu1 %v5510_v30  ;;  %v5597_v29 = vld [vmem:[%s6666_s12 + $0x3c0] ss:$16 sps:$4 sm:$0xff]   ;;  %v5600_v30 = vld [vmem:[%s6666_s12 + $0x3c8] ss:$16 sps:$4 sm:$0xff]  }
 0x1f0   : > { %3862 = vmatprep.subr.bf16.mxu0 %v5514_v31  ;;  %4190 = vmatprep.subr.bf16.mxu1 %v5517_v32  ;;  %v5605_v31 = vld [vmem:[%s6666_s12 + $0x3e4] ss:$16 sps:$4 sm:$0xff]   ;;  %v5608_v32 = vld [vmem:[%s6666_s12 + $0x3ec] ss:$16 sps:$4 sm:$0xff]  }
 0x1f2   : > { %3854 = vmatmul.mubr.bf16.vlgmr.msra.gmra.mrb[0].mxu0 %v4700_v34  ;;  %4182 = vmatmul.mubr.bf16.vlgmr.msra.gmra.mrb[0].mxu1 %v4700_v34  ;;  %v5606_v34 = vld [vmem:[%s6666_s12 + $0x3e8] ss:$16 sps:$4 sm:$0xff]  }
 0x1f3   : > { %3863 = vmatpush1.bf16.msra.mxu0 %v5512_v33  ;;  %4191 = vmatpush1.bf16.msra.mxu1 %v5515_v35  ;;  %v5603_v33 = vld [vmem:[%s6666_s12 + $0x3e0] ss:$16 sps:$4 sm:$0xff]   ;;  %v5612_v35 = vld [vmem:[%s6666_s12 + $0x404] ss:$16 sps:$4 sm:$0xff]  }
 0x1f4   : > { %3864 = vmatprep.subr.bf16.mxu0 %v5521_v36  ;;  %4192 = vmatprep.subr.bf16.mxu1 %v5524_v37  ;;  %v5615_v36 = vld [vmem:[%s6666_s12 + $0x40c] ss:$16 sps:$4 sm:$0xff]   ;;  %v5610_v37 = vld [vmem:[%s6666_s12 + $0x400] ss:$16 sps:$4 sm:$0xff]  }
 0x1f5   : > { %3894 = vmatprep.mubr.bf16.mxu0 %v4703_v59  ;;  %4222 = vmatprep.mubr.bf16.mxu1 %v4703_v59  ;;  %v5646_v59 = vld [vmem:[%s6666_s12 + $0x4ac] ss:$16 sps:$4 sm:$0xff]  }
 0x1f7   : > { %3865 = vmatpush1.bf16.msra.mxu0 %v5519_v38  ;;  %4193 = vmatpush1.bf16.msra.mxu1 %v5522_v39  ;;  %v4702_v38 = vcombine.low %v6845_v58, %v6845_v58  ;;  %v5613_v39 = vld [vmem:[%s6666_s12 + $0x408] ss:$16 sps:$4 sm:$0xff]   ;;  %v5643_v58 = vld [vmem:[%s6666_s12 + $0x4a4] ss:$16 sps:$4 sm:$0xff]  }
 0x1f8   : > { %3866 = vmatprep.subr.bf16.mxu0 %v5527_v40  ;;  %4194 = vmatprep.subr.bf16.mxu1 %v5530_v41  ;;  %v5619_v40 = vld [vmem:[%s6666_s12 + $0x424] ss:$16 sps:$4 sm:$0xff]  }
 0x1f9   : > { %v6895_v41 = vld [vmem:[%s6797_s22 + $0x10] sm:$0xff] }
 0x1fb   : > { %3867 = vmatpush1.bf16.msra.mxu0 %v5525_v42  ;;  %4195 = vmatpush1.bf16.msra.mxu1 %v5528_v43  ;;  %v5622_v42 = vld [vmem:[%s6666_s12 + $0x42c] ss:$16 sps:$4 sm:$0xff]   ;;  %v4705_v43 = vcombine.high %v6895_v41, %v6895_v41 }
 0x1fc   : > { %3868 = vmatprep.subr.bf16.mxu0 %v5533_v44  ;;  %4196 = vmatprep.subr.bf16.mxu1 %v5536_v45  ;;  %v5617_v44 = vld [vmem:[%s6666_s12 + $0x420] ss:$16 sps:$4 sm:$0xff]   ;;  %v5620_v45 = vld [vmem:[%s6666_s12 + $0x428] ss:$16 sps:$4 sm:$0xff]  }
 0x1ff   : > { %3869 = vmatpush1.bf16.msra.mxu0 %v5531_v46  ;;  %4197 = vmatpush1.bf16.msra.mxu1 %v5534_v47  ;;  %v5625_v46 = vld [vmem:[%s6666_s12 + $0x444] ss:$16 sps:$4 sm:$0xff]   ;;  %v5628_v47 = vld [vmem:[%s6666_s12 + $0x44c] ss:$16 sps:$4 sm:$0xff]  }
 0x200   : > { %3870 = vmatprep.subr.bf16.mxu0 %v5539_v48  ;;  %4198 = vmatprep.subr.bf16.mxu1 %v5542_v49  ;;  %v5623_v48 = vld [vmem:[%s6666_s12 + $0x440] ss:$16 sps:$4 sm:$0xff]   ;;  %v5626_v49 = vld [vmem:[%s6666_s12 + $0x448] ss:$16 sps:$4 sm:$0xff]  }
 0x203   : > { %3871 = vmatpush1.bf16.msra.mxu0 %v5537_v50  ;;  %4199 = vmatpush1.bf16.msra.mxu1 %v5540_v51  ;;  %v5631_v50 = vld [vmem:[%s6666_s12 + $0x464] ss:$16 sps:$4 sm:$0xff]   ;;  %v5634_v51 = vld [vmem:[%s6666_s12 + $0x46c] ss:$16 sps:$4 sm:$0xff]  }
 0x204   : > { %3872 = vmatprep.subr.bf16.mxu0 %v5545_v52  ;;  %4200 = vmatprep.subr.bf16.mxu1 %v5548_v53  ;;  %v5629_v52 = vld [vmem:[%s6666_s12 + $0x460] ss:$16 sps:$4 sm:$0xff]   ;;  %v5632_v53 = vld [vmem:[%s6666_s12 + $0x468] ss:$16 sps:$4 sm:$0xff]  }
 0x207   : > { %3873 = vmatpush1.bf16.msra.mxu0 %v5543_v54  ;;  %4201 = vmatpush1.bf16.msra.mxu1 %v5546_v55  ;;  %v5637_v54 = vld [vmem:[%s6666_s12 + $0x484] ss:$16 sps:$4 sm:$0xff]   ;;  %v5640_v55 = vld [vmem:[%s6666_s12 + $0x48c] ss:$16 sps:$4 sm:$0xff]  }
 0x208   : > { %3874 = vmatprep.subr.bf16.mxu0 %v5551_v56  ;;  %4202 = vmatprep.subr.bf16.mxu1 %v5554_v57  ;;  %v5635_v56 = vld [vmem:[%s6666_s12 + $0x480] ss:$16 sps:$4 sm:$0xff]   ;;  %v5638_v57 = vld [vmem:[%s6666_s12 + $0x488] ss:$16 sps:$4 sm:$0xff]  }
 0x20b   : > { %3875 = vmatpush1.bf16.msra.mxu0 %v5549_v60  ;;  %4203 = vmatpush1.bf16.msra.mxu1 %v5552_v61  ;;  %v5641_v60 = vld [vmem:[%s6666_s12 + $0x4a0] ss:$16 sps:$4 sm:$0xff]   ;;  %v5644_v61 = vld [vmem:[%s6666_s12 + $0x4a8] ss:$16 sps:$4 sm:$0xff]  }
 0x20c   : > { %3876 = vmatprep.subr.bf16.mxu0 %v5557_v62  ;;  %4204 = vmatprep.subr.bf16.mxu1 %v5560_v63  ;;  %v5649_v62 = vld [vmem:[%s6666_s12 + $0x4c4] ss:$16 sps:$4 sm:$0xff]   ;;  %v5652_v63 = vld [vmem:[%s6666_s12 + $0x4cc] ss:$16 sps:$4 sm:$0xff]  }
 0x20f   : > { %3877 = vmatpush1.bf16.msra.mxu0 %v5555_v1  ;;  %4205 = vmatpush1.bf16.msra.mxu1 %v5558_v2  ;;  %v5647_v1 = vld [vmem:[%s6666_s12 + $0x4c0] ss:$16 sps:$4 sm:$0xff]   ;;  %v5650_v2 = vld [vmem:[%s6666_s12 + $0x4c8] ss:$16 sps:$4 sm:$0xff]  }
 0x210   : > { %3878 = vmatprep.subr.bf16.mxu0 %v5563_v3  ;;  %4206 = vmatprep.subr.bf16.mxu1 %v5566_v4  ;;  %v5655_v3 = vld [vmem:[%s6666_s12 + $0x4e4] ss:$16 sps:$4 sm:$0xff]   ;;  %v5658_v4 = vld [vmem:[%s6666_s12 + $0x4ec] ss:$16 sps:$4 sm:$0xff]  }
 0x213   : > { %3879 = vmatpush1.bf16.msra.mxu0 %v5561_v5  ;;  %4207 = vmatpush1.bf16.msra.mxu1 %v5564_v6  ;;  %v5653_v5 = vld [vmem:[%s6666_s12 + $0x4e0] ss:$16 sps:$4 sm:$0xff]   ;;  %v5656_v6 = vld [vmem:[%s6666_s12 + $0x4e8] ss:$16 sps:$4 sm:$0xff]  }
 0x214   : > { %3880 = vmatprep.subr.bf16.mxu0 %v5569_v7  ;;  %4208 = vmatprep.subr.bf16.mxu1 %v5572_v8  ;;  %v5661_v7 = vld [vmem:[%s6666_s12 + $0x504] ss:$16 sps:$4 sm:$0xff]   ;;  %v5664_v8 = vld [vmem:[%s6666_s12 + $0x50c] ss:$16 sps:$4 sm:$0xff]  }
 0x217   : > { %3881 = vmatpush1.bf16.msra.mxu0 %v5567_v9  ;;  %4209 = vmatpush1.bf16.msra.mxu1 %v5570_v10  ;;  %v5659_v9 = vld [vmem:[%s6666_s12 + $0x500] ss:$16 sps:$4 sm:$0xff]   ;;  %v5662_v10 = vld [vmem:[%s6666_s12 + $0x508] ss:$16 sps:$4 sm:$0xff]  }
 0x218   : > { %3882 = vmatprep.subr.bf16.mxu0 %v5575_v11  ;;  %4210 = vmatprep.subr.bf16.mxu1 %v5578_v12  ;;  %v5667_v11 = vld [vmem:[%s6666_s12 + $0x524] ss:$16 sps:$4 sm:$0xff]   ;;  %v5670_v12 = vld [vmem:[%s6666_s12 + $0x52c] ss:$16 sps:$4 sm:$0xff]  }
 0x21b   : > { %3883 = vmatpush1.bf16.msra.mxu0 %v5573_v13  ;;  %4211 = vmatpush1.bf16.msra.mxu1 %v5576_v14  ;;  %v5665_v13 = vld [vmem:[%s6666_s12 + $0x520] ss:$16 sps:$4 sm:$0xff]   ;;  %v5668_v14 = vld [vmem:[%s6666_s12 + $0x528] ss:$16 sps:$4 sm:$0xff]  }
 0x21c   : > { %3884 = vmatprep.subr.bf16.mxu0 %v5581_v15  ;;  %4212 = vmatprep.subr.bf16.mxu1 %v5584_v16  ;;  %v5673_v15 = vld [vmem:[%s6666_s12 + $0x544] ss:$16 sps:$4 sm:$0xff]   ;;  %v5676_v16 = vld [vmem:[%s6666_s12 + $0x54c] ss:$16 sps:$4 sm:$0xff]  }
 0x21f   : > { %3885 = vmatpush1.bf16.msra.mxu0 %v5579_v17  ;;  %4213 = vmatpush1.bf16.msra.mxu1 %v5582_v18  ;;  %v5671_v17 = vld [vmem:[%s6666_s12 + $0x540] ss:$16 sps:$4 sm:$0xff]   ;;  %v5674_v18 = vld [vmem:[%s6666_s12 + $0x548] ss:$16 sps:$4 sm:$0xff]  }
 0x220   : > { %3886 = vmatprep.subr.bf16.mxu0 %v5587_v19  ;;  %4214 = vmatprep.subr.bf16.mxu1 %v5590_v20  ;;  %v5679_v19 = vld [vmem:[%s6666_s12 + $0x564] ss:$16 sps:$4 sm:$0xff]   ;;  %v5682_v20 = vld [vmem:[%s6666_s12 + $0x56c] ss:$16 sps:$4 sm:$0xff]  }
 0x223   : > { %3887 = vmatpush1.bf16.msra.mxu0 %v5585_v21  ;;  %4215 = vmatpush1.bf16.msra.mxu1 %v5588_v22  ;;  %v5677_v21 = vld [vmem:[%s6666_s12 + $0x560] ss:$16 sps:$4 sm:$0xff]   ;;  %v5680_v22 = vld [vmem:[%s6666_s12 + $0x568] ss:$16 sps:$4 sm:$0xff]  }
 0x224   : > { %3888 = vmatprep.subr.bf16.mxu0 %v5593_v23  ;;  %4216 = vmatprep.subr.bf16.mxu1 %v5596_v24  ;;  %v5685_v23 = vld [vmem:[%s6666_s12 + $0x584] ss:$16 sps:$4 sm:$0xff]   ;;  %v5688_v24 = vld [vmem:[%s6666_s12 + $0x58c] ss:$16 sps:$4 sm:$0xff]  }
 0x227   : > { %3889 = vmatpush1.bf16.msra.mxu0 %v5591_v25  ;;  %4217 = vmatpush1.bf16.msra.mxu1 %v5594_v26  ;;  %v5683_v25 = vld [vmem:[%s6666_s12 + $0x580] ss:$16 sps:$4 sm:$0xff]   ;;  %v5686_v26 = vld [vmem:[%s6666_s12 + $0x588] ss:$16 sps:$4 sm:$0xff]  }
 0x228   : > { %3890 = vmatprep.subr.bf16.mxu0 %v5599_v27  ;;  %4218 = vmatprep.subr.bf16.mxu1 %v5602_v28  ;;  %v5691_v27 = vld [vmem:[%s6666_s12 + $0x5a4] ss:$16 sps:$4 sm:$0xff]   ;;  %v5694_v28 = vld [vmem:[%s6666_s12 + $0x5ac] ss:$16 sps:$4 sm:$0xff]  }
 0x22b   : > { %3891 = vmatpush1.bf16.msra.mxu0 %v5597_v29  ;;  %4219 = vmatpush1.bf16.msra.mxu1 %v5600_v30  ;;  %v5689_v29 = vld [vmem:[%s6666_s12 + $0x5a0] ss:$16 sps:$4 sm:$0xff]   ;;  %v5692_v30 = vld [vmem:[%s6666_s12 + $0x5a8] ss:$16 sps:$4 sm:$0xff]  }
 0x22c   : > { %3892 = vmatprep.subr.bf16.mxu0 %v5605_v31  ;;  %4220 = vmatprep.subr.bf16.mxu1 %v5608_v32  ;;  %v5697_v31 = vld [vmem:[%s6666_s12 + $0x5c4] ss:$16 sps:$4 sm:$0xff]   ;;  %v5700_v32 = vld [vmem:[%s6666_s12 + $0x5cc] ss:$16 sps:$4 sm:$0xff]  }
 0x22f   : > { %3893 = vmatpush1.bf16.msra.mxu0 %v5603_v33  ;;  %4221 = vmatpush1.bf16.msra.mxu1 %v5606_v34  ;;  %v5695_v33 = vld [vmem:[%s6666_s12 + $0x5c0] ss:$16 sps:$4 sm:$0xff]   ;;  %v5698_v34 = vld [vmem:[%s6666_s12 + $0x5c8] ss:$16 sps:$4 sm:$0xff]  }
 0x230   : > { %3903 = vmatprep.subr.bf16.mxu0 %v5612_v35  ;;  %4231 = vmatprep.subr.bf16.mxu1 %v5615_v36  ;;  %v5703_v35 = vld [vmem:[%s6666_s12 + $0x5e4] ss:$16 sps:$4 sm:$0xff]   ;;  %v5706_v36 = vld [vmem:[%s6666_s12 + $0x5ec] ss:$16 sps:$4 sm:$0xff]  }
 0x232   : > { %3895 = vmatmul.mubr.bf16.vlgmr.msra.gmra.mrb[0].mxu0 %v4702_v38  ;;  %4223 = vmatmul.mubr.bf16.vlgmr.msra.gmra.mrb[0].mxu1 %v4702_v38  ;;  %v5704_v38 = vld [vmem:[%s6666_s12 + $0x5e8] ss:$16 sps:$4 sm:$0xff]  }
 0x233   : > { %3904 = vmatpush1.bf16.msra.mxu0 %v5610_v37  ;;  %4232 = vmatpush1.bf16.msra.mxu1 %v5613_v39  ;;  %v5701_v37 = vld [vmem:[%s6666_s12 + $0x5e0] ss:$16 sps:$4 sm:$0xff]   ;;  %v5710_v39 = vld [vmem:[%s6666_s12 + $0x604] ss:$16 sps:$4 sm:$0xff]  }
 0x234   : > { %3905 = vmatprep.subr.bf16.mxu0 %v5619_v40  ;;  %4233 = vmatprep.subr.bf16.mxu1 %v5622_v42  ;;  %v5713_v40 = vld [vmem:[%s6666_s12 + $0x60c] ss:$16 sps:$4 sm:$0xff]   ;;  %v5708_v42 = vld [vmem:[%s6666_s12 + $0x600] ss:$16 sps:$4 sm:$0xff]  }
 0x235   : > { %3935 = vmatprep.mubr.bf16.mxu0 %v4705_v43  ;;  %4263 = vmatprep.mubr.bf16.mxu1 %v4705_v43  ;;  %v5711_v43 = vld [vmem:[%s6666_s12 + $0x608] ss:$16 sps:$4 sm:$0xff]  }
 0x237   : > { %3906 = vmatpush1.bf16.msra.mxu0 %v5617_v44  ;;  %4234 = vmatpush1.bf16.msra.mxu1 %v5620_v45  ;;  %v4704_v44 = vcombine.low %v6895_v41, %v6895_v41  ;;  %v6965_v45 = vld [vmem:[%s6797_s22 + $0x18] sm:$0xff]  ;;  %v5723_v41 = vld [vmem:[%s6666_s12 + $0x644] ss:$16 sps:$4 sm:$0xff]  }
 0x238   : > { %3907 = vmatprep.subr.bf16.mxu0 %v5625_v46  ;;  %4235 = vmatprep.subr.bf16.mxu1 %v5628_v47  ;;  %v5717_v46 = vld [vmem:[%s6666_s12 + $0x624] ss:$16 sps:$4 sm:$0xff]   ;;  %v5720_v47 = vld [vmem:[%s6666_s12 + $0x62c] ss:$16 sps:$4 sm:$0xff]  }
 0x23b   : > { %3908 = vmatpush1.bf16.msra.mxu0 %v5623_v48  ;;  %4236 = vmatpush1.bf16.msra.mxu1 %v5626_v49  ;;  %v4707_v48 = vcombine.high %v6965_v45, %v6965_v45  ;;  %v5715_v49 = vld [vmem:[%s6666_s12 + $0x620] ss:$16 sps:$4 sm:$0xff]  }
 0x23c   : > { %3909 = vmatprep.subr.bf16.mxu0 %v5631_v50  ;;  %4237 = vmatprep.subr.bf16.mxu1 %v5634_v51  ;;  %v5718_v50 = vld [vmem:[%s6666_s12 + $0x628] ss:$16 sps:$4 sm:$0xff]   ;;  %v5726_v51 = vld [vmem:[%s6666_s12 + $0x64c] ss:$16 sps:$4 sm:$0xff]  }
 0x23f   : > { %3910 = vmatpush1.bf16.msra.mxu0 %v5629_v52  ;;  %4238 = vmatpush1.bf16.msra.mxu1 %v5632_v53  ;;  %v5721_v52 = vld [vmem:[%s6666_s12 + $0x640] ss:$16 sps:$4 sm:$0xff]   ;;  %v5724_v53 = vld [vmem:[%s6666_s12 + $0x648] ss:$16 sps:$4 sm:$0xff]  }
 0x240   : > { %3911 = vmatprep.subr.bf16.mxu0 %v5637_v54  ;;  %4239 = vmatprep.subr.bf16.mxu1 %v5640_v55  ;;  %v5729_v54 = vld [vmem:[%s6666_s12 + $0x664] ss:$16 sps:$4 sm:$0xff]   ;;  %v5732_v55 = vld [vmem:[%s6666_s12 + $0x66c] ss:$16 sps:$4 sm:$0xff]  }
 0x243   : > { %3912 = vmatpush1.bf16.msra.mxu0 %v5635_v56  ;;  %4240 = vmatpush1.bf16.msra.mxu1 %v5638_v57  ;;  %v5727_v56 = vld [vmem:[%s6666_s12 + $0x660] ss:$16 sps:$4 sm:$0xff]   ;;  %v5730_v57 = vld [vmem:[%s6666_s12 + $0x668] ss:$16 sps:$4 sm:$0xff]  }
 0x244   : > { %3913 = vmatprep.subr.bf16.mxu0 %v5643_v58  ;;  %4241 = vmatprep.subr.bf16.mxu1 %v5646_v59  ;;  %v5735_v58 = vld [vmem:[%s6666_s12 + $0x684] ss:$16 sps:$4 sm:$0xff]   ;;  %v5738_v59 = vld [vmem:[%s6666_s12 + $0x68c] ss:$16 sps:$4 sm:$0xff]  }
 0x247   : > { %3914 = vmatpush1.bf16.msra.mxu0 %v5641_v60  ;;  %4242 = vmatpush1.bf16.msra.mxu1 %v5644_v61  ;;  %v5733_v60 = vld [vmem:[%s6666_s12 + $0x680] ss:$16 sps:$4 sm:$0xff]   ;;  %v5736_v61 = vld [vmem:[%s6666_s12 + $0x688] ss:$16 sps:$4 sm:$0xff]  }
 0x248   : > { %3915 = vmatprep.subr.bf16.mxu0 %v5649_v62  ;;  %4243 = vmatprep.subr.bf16.mxu1 %v5652_v63  ;;  %v5741_v62 = vld [vmem:[%s6666_s12 + $0x6a4] ss:$16 sps:$4 sm:$0xff]   ;;  %v5744_v63 = vld [vmem:[%s6666_s12 + $0x6ac] ss:$16 sps:$4 sm:$0xff]  }
 0x24b   : > { %3916 = vmatpush1.bf16.msra.mxu0 %v5647_v1  ;;  %4244 = vmatpush1.bf16.msra.mxu1 %v5650_v2  ;;  %v5739_v1 = vld [vmem:[%s6666_s12 + $0x6a0] ss:$16 sps:$4 sm:$0xff]   ;;  %v5742_v2 = vld [vmem:[%s6666_s12 + $0x6a8] ss:$16 sps:$4 sm:$0xff]  }
 0x24c   : > { %3917 = vmatprep.subr.bf16.mxu0 %v5655_v3  ;;  %4245 = vmatprep.subr.bf16.mxu1 %v5658_v4  ;;  %v5747_v3 = vld [vmem:[%s6666_s12 + $0x6c4] ss:$16 sps:$4 sm:$0xff]   ;;  %v5750_v4 = vld [vmem:[%s6666_s12 + $0x6cc] ss:$16 sps:$4 sm:$0xff]  }
 0x24f   : > { %3918 = vmatpush1.bf16.msra.mxu0 %v5653_v5  ;;  %4246 = vmatpush1.bf16.msra.mxu1 %v5656_v6  ;;  %v5745_v5 = vld [vmem:[%s6666_s12 + $0x6c0] ss:$16 sps:$4 sm:$0xff]   ;;  %v5748_v6 = vld [vmem:[%s6666_s12 + $0x6c8] ss:$16 sps:$4 sm:$0xff]  }
 0x250   : > { %3919 = vmatprep.subr.bf16.mxu0 %v5661_v7  ;;  %4247 = vmatprep.subr.bf16.mxu1 %v5664_v8  ;;  %v5753_v7 = vld [vmem:[%s6666_s12 + $0x6e4] ss:$16 sps:$4 sm:$0xff]   ;;  %v5756_v8 = vld [vmem:[%s6666_s12 + $0x6ec] ss:$16 sps:$4 sm:$0xff]  }
 0x253   : > { %3920 = vmatpush1.bf16.msra.mxu0 %v5659_v9  ;;  %4248 = vmatpush1.bf16.msra.mxu1 %v5662_v10  ;;  %v5751_v9 = vld [vmem:[%s6666_s12 + $0x6e0] ss:$16 sps:$4 sm:$0xff]   ;;  %v5754_v10 = vld [vmem:[%s6666_s12 + $0x6e8] ss:$16 sps:$4 sm:$0xff]  }
 0x254   : > { %3921 = vmatprep.subr.bf16.mxu0 %v5667_v11  ;;  %4249 = vmatprep.subr.bf16.mxu1 %v5670_v12  ;;  %v5759_v11 = vld [vmem:[%s6666_s12 + $0x704] ss:$16 sps:$4 sm:$0xff]   ;;  %v5762_v12 = vld [vmem:[%s6666_s12 + $0x70c] ss:$16 sps:$4 sm:$0xff]  }
 0x257   : > { %3922 = vmatpush1.bf16.msra.mxu0 %v5665_v13  ;;  %4250 = vmatpush1.bf16.msra.mxu1 %v5668_v14  ;;  %v5757_v13 = vld [vmem:[%s6666_s12 + $0x700] ss:$16 sps:$4 sm:$0xff]   ;;  %v5760_v14 = vld [vmem:[%s6666_s12 + $0x708] ss:$16 sps:$4 sm:$0xff]  }
 0x258   : > { %3923 = vmatprep.subr.bf16.mxu0 %v5673_v15  ;;  %4251 = vmatprep.subr.bf16.mxu1 %v5676_v16  ;;  %v5765_v15 = vld [vmem:[%s6666_s12 + $0x724] ss:$16 sps:$4 sm:$0xff]   ;;  %v5768_v16 = vld [vmem:[%s6666_s12 + $0x72c] ss:$16 sps:$4 sm:$0xff]  }
 0x25b   : > { %3924 = vmatpush1.bf16.msra.mxu0 %v5671_v17  ;;  %4252 = vmatpush1.bf16.msra.mxu1 %v5674_v18  ;;  %v5763_v17 = vld [vmem:[%s6666_s12 + $0x720] ss:$16 sps:$4 sm:$0xff]   ;;  %v5766_v18 = vld [vmem:[%s6666_s12 + $0x728] ss:$16 sps:$4 sm:$0xff]  }
 0x25c   : > { %3925 = vmatprep.subr.bf16.mxu0 %v5679_v19  ;;  %4253 = vmatprep.subr.bf16.mxu1 %v5682_v20  ;;  %v5771_v19 = vld [vmem:[%s6666_s12 + $0x744] ss:$16 sps:$4 sm:$0xff]   ;;  %v5774_v20 = vld [vmem:[%s6666_s12 + $0x74c] ss:$16 sps:$4 sm:$0xff]  }
 0x25f   : > { %3926 = vmatpush1.bf16.msra.mxu0 %v5677_v21  ;;  %4254 = vmatpush1.bf16.msra.mxu1 %v5680_v22  ;;  %v5769_v21 = vld [vmem:[%s6666_s12 + $0x740] ss:$16 sps:$4 sm:$0xff]   ;;  %v5772_v22 = vld [vmem:[%s6666_s12 + $0x748] ss:$16 sps:$4 sm:$0xff]  }
 0x260   : > { %3927 = vmatprep.subr.bf16.mxu0 %v5685_v23  ;;  %4255 = vmatprep.subr.bf16.mxu1 %v5688_v24  ;;  %v5777_v23 = vld [vmem:[%s6666_s12 + $0x764] ss:$16 sps:$4 sm:$0xff]   ;;  %v5780_v24 = vld [vmem:[%s6666_s12 + $0x76c] ss:$16 sps:$4 sm:$0xff]  }
 0x263   : > { %3928 = vmatpush1.bf16.msra.mxu0 %v5683_v25  ;;  %4256 = vmatpush1.bf16.msra.mxu1 %v5686_v26  ;;  %v5775_v25 = vld [vmem:[%s6666_s12 + $0x760] ss:$16 sps:$4 sm:$0xff]   ;;  %v5778_v26 = vld [vmem:[%s6666_s12 + $0x768] ss:$16 sps:$4 sm:$0xff]  }
 0x264   : > { %3929 = vmatprep.subr.bf16.mxu0 %v5691_v27  ;;  %4257 = vmatprep.subr.bf16.mxu1 %v5694_v28  ;;  %v5783_v27 = vld [vmem:[%s6666_s12 + $0x784] ss:$16 sps:$4 sm:$0xff]   ;;  %v5786_v28 = vld [vmem:[%s6666_s12 + $0x78c] ss:$16 sps:$4 sm:$0xff]  }
 0x267   : > { %3930 = vmatpush1.bf16.msra.mxu0 %v5689_v29  ;;  %4258 = vmatpush1.bf16.msra.mxu1 %v5692_v30  ;;  %v5781_v29 = vld [vmem:[%s6666_s12 + $0x780] ss:$16 sps:$4 sm:$0xff]   ;;  %v5784_v30 = vld [vmem:[%s6666_s12 + $0x788] ss:$16 sps:$4 sm:$0xff]  }
 0x268   : > { %3931 = vmatprep.subr.bf16.mxu0 %v5697_v31  ;;  %4259 = vmatprep.subr.bf16.mxu1 %v5700_v32  ;;  %v5789_v31 = vld [vmem:[%s6666_s12 + $0x7a4] ss:$16 sps:$4 sm:$0xff]   ;;  %v5792_v32 = vld [vmem:[%s6666_s12 + $0x7ac] ss:$16 sps:$4 sm:$0xff]  }
 0x26b   : > { %3932 = vmatpush1.bf16.msra.mxu0 %v5695_v33  ;;  %4260 = vmatpush1.bf16.msra.mxu1 %v5698_v34  ;;  %v5787_v33 = vld [vmem:[%s6666_s12 + $0x7a0] ss:$16 sps:$4 sm:$0xff]   ;;  %v5790_v34 = vld [vmem:[%s6666_s12 + $0x7a8] ss:$16 sps:$4 sm:$0xff]  }
 0x26c   : > { %3933 = vmatprep.subr.bf16.mxu0 %v5703_v35  ;;  %4261 = vmatprep.subr.bf16.mxu1 %v5706_v36  ;;  %v5795_v35 = vld [vmem:[%s6666_s12 + $0x7c4] ss:$16 sps:$4 sm:$0xff]   ;;  %v5798_v36 = vld [vmem:[%s6666_s12 + $0x7cc] ss:$16 sps:$4 sm:$0xff]  }
 0x26f   : > { %3934 = vmatpush1.bf16.msra.mxu0 %v5701_v37  ;;  %4262 = vmatpush1.bf16.msra.mxu1 %v5704_v38  ;;  %v5793_v37 = vld [vmem:[%s6666_s12 + $0x7c0] ss:$16 sps:$4 sm:$0xff]   ;;  %v5796_v38 = vld [vmem:[%s6666_s12 + $0x7c8] ss:$16 sps:$4 sm:$0xff]  }
 0x270   : > { %3944 = vmatprep.subr.bf16.mxu0 %v5710_v39  ;;  %4272 = vmatprep.subr.bf16.mxu1 %v5713_v40  ;;  %v5801_v39 = vld [vmem:[%s6666_s12 + $0x7e4] ss:$16 sps:$4 sm:$0xff]   ;;  %v5804_v40 = vld [vmem:[%s6666_s12 + $0x7ec] ss:$16 sps:$4 sm:$0xff]  }
 0x272   : > { %3936 = vmatmul.mubr.bf16.vlgmr.msra.gmra.mrb[0].mxu0 %v4704_v44  ;;  %4264 = vmatmul.mubr.bf16.vlgmr.msra.gmra.mrb[0].mxu1 %v4704_v44  ;;  %v5808_v44 = vld [vmem:[%s6666_s12 + $0x804] ss:$16 sps:$4 sm:$0xff]  }
 0x273   : > { %3945 = vmatpush1.bf16.msra.mxu0 %v5708_v42  ;;  %4273 = vmatpush1.bf16.msra.mxu1 %v5711_v43  ;;  %v5799_v42 = vld [vmem:[%s6666_s12 + $0x7e0] ss:$16 sps:$4 sm:$0xff]   ;;  %v5802_v43 = vld [vmem:[%s6666_s12 + $0x7e8] ss:$16 sps:$4 sm:$0xff]  }
 0x274   : > { %3946 = vmatprep.subr.bf16.mxu0 %v5717_v46  ;;  %4274 = vmatprep.subr.bf16.mxu1 %v5720_v47  ;;  %v5811_v46 = vld [vmem:[%s6666_s12 + $0x80c] ss:$16 sps:$4 sm:$0xff]   ;;  %v5806_v47 = vld [vmem:[%s6666_s12 + $0x800] ss:$16 sps:$4 sm:$0xff]  }
 0x275   : > { %3976 = vmatprep.mubr.bf16.mxu0 %v4707_v48  ;;  %4304 = vmatprep.mubr.bf16.mxu1 %v4707_v48  ;;  %v4706_v48 = vcombine.low %v6965_v45, %v6965_v45  ;;  %v5813_v45 = vld [vmem:[%s6666_s12 + $0x820] ss:$16 sps:$4 sm:$0xff]  }
 0x277   : > { %3947 = vmatpush1.bf16.msra.mxu0 %v5715_v49  ;;  %4275 = vmatpush1.bf16.msra.mxu1 %v5718_v50  ;;  %v7035_v49 = vld [vmem:[%s6797_s22 + $0x20] sm:$0xff]  ;;  %v5809_v50 = vld [vmem:[%s6666_s12 + $0x808] ss:$16 sps:$4 sm:$0xff]  }
 0x278   : > { %3948 = vmatprep.subr.bf16.mxu0 %v5723_v41  ;;  %4276 = vmatprep.subr.bf16.mxu1 %v5726_v51  ;;  %v5815_v41 = vld [vmem:[%s6666_s12 + $0x824] ss:$16 sps:$4 sm:$0xff]   ;;  %v5818_v51 = vld [vmem:[%s6666_s12 + $0x82c] ss:$16 sps:$4 sm:$0xff]  }
 0x27b   : > { %3949 = vmatpush1.bf16.msra.mxu0 %v5721_v52  ;;  %4277 = vmatpush1.bf16.msra.mxu1 %v5724_v53  ;;  %v4709_v52 = vcombine.high %v7035_v49, %v7035_v49  ;;  %v5816_v53 = vld [vmem:[%s6666_s12 + $0x828] ss:$16 sps:$4 sm:$0xff]  }
 0x27c   : > { %3950 = vmatprep.subr.bf16.mxu0 %v5729_v54  ;;  %4278 = vmatprep.subr.bf16.mxu1 %v5732_v55  ;;  %v5821_v54 = vld [vmem:[%s6666_s12 + $0x844] ss:$16 sps:$4 sm:$0xff]   ;;  %v5824_v55 = vld [vmem:[%s6666_s12 + $0x84c] ss:$16 sps:$4 sm:$0xff]  }
 0x27f   : > { %3951 = vmatpush1.bf16.msra.mxu0 %v5727_v56  ;;  %4279 = vmatpush1.bf16.msra.mxu1 %v5730_v57  ;;  %v5819_v56 = vld [vmem:[%s6666_s12 + $0x840] ss:$16 sps:$4 sm:$0xff]   ;;  %v5822_v57 = vld [vmem:[%s6666_s12 + $0x848] ss:$16 sps:$4 sm:$0xff]  }
 0x280   : > { %3952 = vmatprep.subr.bf16.mxu0 %v5735_v58  ;;  %4280 = vmatprep.subr.bf16.mxu1 %v5738_v59  ;;  %v5827_v58 = vld [vmem:[%s6666_s12 + $0x864] ss:$16 sps:$4 sm:$0xff]   ;;  %v5830_v59 = vld [vmem:[%s6666_s12 + $0x86c] ss:$16 sps:$4 sm:$0xff]  }
 0x283   : > { %3953 = vmatpush1.bf16.msra.mxu0 %v5733_v60  ;;  %4281 = vmatpush1.bf16.msra.mxu1 %v5736_v61  ;;  %v5825_v60 = vld [vmem:[%s6666_s12 + $0x860] ss:$16 sps:$4 sm:$0xff]   ;;  %v5828_v61 = vld [vmem:[%s6666_s12 + $0x868] ss:$16 sps:$4 sm:$0xff]  }
 0x284   : > { %3954 = vmatprep.subr.bf16.mxu0 %v5741_v62  ;;  %4282 = vmatprep.subr.bf16.mxu1 %v5744_v63  ;;  %v5833_v62 = vld [vmem:[%s6666_s12 + $0x884] ss:$16 sps:$4 sm:$0xff]   ;;  %v5836_v63 = vld [vmem:[%s6666_s12 + $0x88c] ss:$16 sps:$4 sm:$0xff]  }
 0x287   : > { %3955 = vmatpush1.bf16.msra.mxu0 %v5739_v1  ;;  %4283 = vmatpush1.bf16.msra.mxu1 %v5742_v2  ;;  %v5831_v1 = vld [vmem:[%s6666_s12 + $0x880] ss:$16 sps:$4 sm:$0xff]   ;;  %v5834_v2 = vld [vmem:[%s6666_s12 + $0x888] ss:$16 sps:$4 sm:$0xff]  }
 0x288   : > { %3956 = vmatprep.subr.bf16.mxu0 %v5747_v3  ;;  %4284 = vmatprep.subr.bf16.mxu1 %v5750_v4  ;;  %v5839_v3 = vld [vmem:[%s6666_s12 + $0x8a4] ss:$16 sps:$4 sm:$0xff]   ;;  %v5842_v4 = vld [vmem:[%s6666_s12 + $0x8ac] ss:$16 sps:$4 sm:$0xff]  }
 0x28b   : > { %3957 = vmatpush1.bf16.msra.mxu0 %v5745_v5  ;;  %4285 = vmatpush1.bf16.msra.mxu1 %v5748_v6  ;;  %v5837_v5 = vld [vmem:[%s6666_s12 + $0x8a0] ss:$16 sps:$4 sm:$0xff]   ;;  %v5840_v6 = vld [vmem:[%s6666_s12 + $0x8a8] ss:$16 sps:$4 sm:$0xff]  }
 0x28c   : > { %3958 = vmatprep.subr.bf16.mxu0 %v5753_v7  ;;  %4286 = vmatprep.subr.bf16.mxu1 %v5756_v8  ;;  %v5845_v7 = vld [vmem:[%s6666_s12 + $0x8c4] ss:$16 sps:$4 sm:$0xff]   ;;  %v5848_v8 = vld [vmem:[%s6666_s12 + $0x8cc] ss:$16 sps:$4 sm:$0xff]  }
 0x28f   : > { %3959 = vmatpush1.bf16.msra.mxu0 %v5751_v9  ;;  %4287 = vmatpush1.bf16.msra.mxu1 %v5754_v10  ;;  %v5843_v9 = vld [vmem:[%s6666_s12 + $0x8c0] ss:$16 sps:$4 sm:$0xff]   ;;  %v5846_v10 = vld [vmem:[%s6666_s12 + $0x8c8] ss:$16 sps:$4 sm:$0xff]  }
 0x290   : > { %3960 = vmatprep.subr.bf16.mxu0 %v5759_v11  ;;  %4288 = vmatprep.subr.bf16.mxu1 %v5762_v12  ;;  %v5851_v11 = vld [vmem:[%s6666_s12 + $0x8e4] ss:$16 sps:$4 sm:$0xff]   ;;  %v5854_v12 = vld [vmem:[%s6666_s12 + $0x8ec] ss:$16 sps:$4 sm:$0xff]  }
 0x293   : > { %3961 = vmatpush1.bf16.msra.mxu0 %v5757_v13  ;;  %4289 = vmatpush1.bf16.msra.mxu1 %v5760_v14  ;;  %v5849_v13 = vld [vmem:[%s6666_s12 + $0x8e0] ss:$16 sps:$4 sm:$0xff]   ;;  %v5852_v14 = vld [vmem:[%s6666_s12 + $0x8e8] ss:$16 sps:$4 sm:$0xff]  }
 0x294   : > { %3962 = vmatprep.subr.bf16.mxu0 %v5765_v15  ;;  %4290 = vmatprep.subr.bf16.mxu1 %v5768_v16  ;;  %v5857_v15 = vld [vmem:[%s6666_s12 + $0x904] ss:$16 sps:$4 sm:$0xff]   ;;  %v5860_v16 = vld [vmem:[%s6666_s12 + $0x90c] ss:$16 sps:$4 sm:$0xff]  }
 0x297   : > { %3963 = vmatpush1.bf16.msra.mxu0 %v5763_v17  ;;  %4291 = vmatpush1.bf16.msra.mxu1 %v5766_v18  ;;  %v5855_v17 = vld [vmem:[%s6666_s12 + $0x900] ss:$16 sps:$4 sm:$0xff]   ;;  %v5858_v18 = vld [vmem:[%s6666_s12 + $0x908] ss:$16 sps:$4 sm:$0xff]  }
 0x298   : > { %3964 = vmatprep.subr.bf16.mxu0 %v5771_v19  ;;  %4292 = vmatprep.subr.bf16.mxu1 %v5774_v20  ;;  %v5863_v19 = vld [vmem:[%s6666_s12 + $0x924] ss:$16 sps:$4 sm:$0xff]   ;;  %v5866_v20 = vld [vmem:[%s6666_s12 + $0x92c] ss:$16 sps:$4 sm:$0xff]  }
 0x29b   : > { %3965 = vmatpush1.bf16.msra.mxu0 %v5769_v21  ;;  %4293 = vmatpush1.bf16.msra.mxu1 %v5772_v22  ;;  %v5861_v21 = vld [vmem:[%s6666_s12 + $0x920] ss:$16 sps:$4 sm:$0xff]   ;;  %v5864_v22 = vld [vmem:[%s6666_s12 + $0x928] ss:$16 sps:$4 sm:$0xff]  }
 0x29c   : > { %3966 = vmatprep.subr.bf16.mxu0 %v5777_v23  ;;  %4294 = vmatprep.subr.bf16.mxu1 %v5780_v24  ;;  %v5869_v23 = vld [vmem:[%s6666_s12 + $0x944] ss:$16 sps:$4 sm:$0xff]   ;;  %v5872_v24 = vld [vmem:[%s6666_s12 + $0x94c] ss:$16 sps:$4 sm:$0xff]  }
 0x29f   : > { %3967 = vmatpush1.bf16.msra.mxu0 %v5775_v25  ;;  %4295 = vmatpush1.bf16.msra.mxu1 %v5778_v26  ;;  %v5867_v25 = vld [vmem:[%s6666_s12 + $0x940] ss:$16 sps:$4 sm:$0xff]   ;;  %v5870_v26 = vld [vmem:[%s6666_s12 + $0x948] ss:$16 sps:$4 sm:$0xff]  }
 0x2a0   : > { %3968 = vmatprep.subr.bf16.mxu0 %v5783_v27  ;;  %4296 = vmatprep.subr.bf16.mxu1 %v5786_v28  ;;  %v5875_v27 = vld [vmem:[%s6666_s12 + $0x964] ss:$16 sps:$4 sm:$0xff]   ;;  %v5878_v28 = vld [vmem:[%s6666_s12 + $0x96c] ss:$16 sps:$4 sm:$0xff]  }
 0x2a3   : > { %3969 = vmatpush1.bf16.msra.mxu0 %v5781_v29  ;;  %4297 = vmatpush1.bf16.msra.mxu1 %v5784_v30  ;;  %v5873_v29 = vld [vmem:[%s6666_s12 + $0x960] ss:$16 sps:$4 sm:$0xff]   ;;  %v5876_v30 = vld [vmem:[%s6666_s12 + $0x968] ss:$16 sps:$4 sm:$0xff]  }
 0x2a4   : > { %3970 = vmatprep.subr.bf16.mxu0 %v5789_v31  ;;  %4298 = vmatprep.subr.bf16.mxu1 %v5792_v32  ;;  %v5881_v31 = vld [vmem:[%s6666_s12 + $0x984] ss:$16 sps:$4 sm:$0xff]   ;;  %v5884_v32 = vld [vmem:[%s6666_s12 + $0x98c] ss:$16 sps:$4 sm:$0xff]  }
 0x2a7   : > { %3971 = vmatpush1.bf16.msra.mxu0 %v5787_v33  ;;  %4299 = vmatpush1.bf16.msra.mxu1 %v5790_v34  ;;  %v5879_v33 = vld [vmem:[%s6666_s12 + $0x980] ss:$16 sps:$4 sm:$0xff]   ;;  %v5882_v34 = vld [vmem:[%s6666_s12 + $0x988] ss:$16 sps:$4 sm:$0xff]  }
 0x2a8   : > { %3972 = vmatprep.subr.bf16.mxu0 %v5795_v35  ;;  %4300 = vmatprep.subr.bf16.mxu1 %v5798_v36  ;;  %v5887_v35 = vld [vmem:[%s6666_s12 + $0x9a4] ss:$16 sps:$4 sm:$0xff]   ;;  %v5890_v36 = vld [vmem:[%s6666_s12 + $0x9ac] ss:$16 sps:$4 sm:$0xff]  }
 0x2ab   : > { %3973 = vmatpush1.bf16.msra.mxu0 %v5793_v37  ;;  %4301 = vmatpush1.bf16.msra.mxu1 %v5796_v38  ;;  %v5885_v37 = vld [vmem:[%s6666_s12 + $0x9a0] ss:$16 sps:$4 sm:$0xff]   ;;  %v5888_v38 = vld [vmem:[%s6666_s12 + $0x9a8] ss:$16 sps:$4 sm:$0xff]  }
 0x2ac   : > { %3974 = vmatprep.subr.bf16.mxu0 %v5801_v39  ;;  %4302 = vmatprep.subr.bf16.mxu1 %v5804_v40  ;;  %v5893_v39 = vld [vmem:[%s6666_s12 + $0x9c4] ss:$16 sps:$4 sm:$0xff]   ;;  %v5896_v40 = vld [vmem:[%s6666_s12 + $0x9cc] ss:$16 sps:$4 sm:$0xff]  }
 0x2af   : > { %3975 = vmatpush1.bf16.msra.mxu0 %v5799_v42  ;;  %4303 = vmatpush1.bf16.msra.mxu1 %v5802_v43  ;;  %v5891_v42 = vld [vmem:[%s6666_s12 + $0x9c0] ss:$16 sps:$4 sm:$0xff]   ;;  %v5894_v43 = vld [vmem:[%s6666_s12 + $0x9c8] ss:$16 sps:$4 sm:$0xff]  }
 0x2b0   : > { %3985 = vmatprep.subr.bf16.mxu0 %v5808_v44  ;;  %4313 = vmatprep.subr.bf16.mxu1 %v5811_v46  ;;  %v5899_v44 = vld [vmem:[%s6666_s12 + $0x9e4] ss:$16 sps:$4 sm:$0xff]   ;;  %v5902_v46 = vld [vmem:[%s6666_s12 + $0x9ec] ss:$16 sps:$4 sm:$0xff]  }
 0x2b2   : > { %3977 = vmatmul.mubr.bf16.vlgmr.msra.gmra.mrb[0].mxu0 %v4706_v48  ;;  %4305 = vmatmul.mubr.bf16.vlgmr.msra.gmra.mrb[0].mxu1 %v4706_v48  ;;  %v5900_v48 = vld [vmem:[%s6666_s12 + $0x9e8] ss:$16 sps:$4 sm:$0xff]  }
 0x2b3   : > { %3986 = vmatpush1.bf16.msra.mxu0 %v5806_v47  ;;  %4314 = vmatpush1.bf16.msra.mxu1 %v5809_v50  ;;  %v5897_v47 = vld [vmem:[%s6666_s12 + $0x9e0] ss:$16 sps:$4 sm:$0xff]   ;;  %v5906_v50 = vld [vmem:[%s6666_s12 + $0xa04] ss:$16 sps:$4 sm:$0xff]  }
 0x2b4   : > { %3987 = vmatprep.subr.bf16.mxu0 %v5815_v41  ;;  %4315 = vmatprep.subr.bf16.mxu1 %v5818_v51  ;;  %v5909_v41 = vld [vmem:[%s6666_s12 + $0xa0c] ss:$16 sps:$4 sm:$0xff]  }
 0x2b5   : > { %4017 = vmatprep.mubr.bf16.mxu0 %v4709_v52  ;;  %4345 = vmatprep.mubr.bf16.mxu1 %v4709_v52  ;;  %v7103_v51 = vld [vmem:[%s6797_s22 + $0x28] sm:$0xff]  ;;  %v4708_v52 = vcombine.low %v7035_v49, %v7035_v49  ;;  %v5911_v49 = vld [vmem:[%s6666_s12 + $0xa20] ss:$16 sps:$4 sm:$0xff]  }
 0x2b7   : > { %3988 = vmatpush1.bf16.msra.mxu0 %v5813_v45  ;;  %4316 = vmatpush1.bf16.msra.mxu1 %v5816_v53  ;;  %v5904_v45 = vld [vmem:[%s6666_s12 + $0xa00] ss:$16 sps:$4 sm:$0xff]   ;;  %v5907_v53 = vld [vmem:[%s6666_s12 + $0xa08] ss:$16 sps:$4 sm:$0xff]  }
 0x2b8   : > { %3989 = vmatprep.subr.bf16.mxu0 %v5821_v54  ;;  %4317 = vmatprep.subr.bf16.mxu1 %v5824_v55  ;;  %v5913_v54 = vld [vmem:[%s6666_s12 + $0xa24] ss:$16 sps:$4 sm:$0xff]   ;;  %v5916_v55 = vld [vmem:[%s6666_s12 + $0xa2c] ss:$16 sps:$4 sm:$0xff]  }
 0x2bb   : > { %3990 = vmatpush1.bf16.msra.mxu0 %v5819_v56  ;;  %4318 = vmatpush1.bf16.msra.mxu1 %v5822_v57  ;;  %v4711_v56 = vcombine.high %v7103_v51, %v7103_v51  ;;  %v5914_v57 = vld [vmem:[%s6666_s12 + $0xa28] ss:$16 sps:$4 sm:$0xff]  }
 0x2bc   : > { %3991 = vmatprep.subr.bf16.mxu0 %v5827_v58  ;;  %4319 = vmatprep.subr.bf16.mxu1 %v5830_v59  ;;  %v5919_v58 = vld [vmem:[%s6666_s12 + $0xa44] ss:$16 sps:$4 sm:$0xff]   ;;  %v5922_v59 = vld [vmem:[%s6666_s12 + $0xa4c] ss:$16 sps:$4 sm:$0xff]  }
 0x2bf   : > { %3992 = vmatpush1.bf16.msra.mxu0 %v5825_v60  ;;  %4320 = vmatpush1.bf16.msra.mxu1 %v5828_v61  ;;  %v5917_v60 = vld [vmem:[%s6666_s12 + $0xa40] ss:$16 sps:$4 sm:$0xff]   ;;  %v5920_v61 = vld [vmem:[%s6666_s12 + $0xa48] ss:$16 sps:$4 sm:$0xff]  }
 0x2c0   : > { %3993 = vmatprep.subr.bf16.mxu0 %v5833_v62  ;;  %4321 = vmatprep.subr.bf16.mxu1 %v5836_v63  ;;  %v5925_v62 = vld [vmem:[%s6666_s12 + $0xa64] ss:$16 sps:$4 sm:$0xff]   ;;  %v5928_v63 = vld [vmem:[%s6666_s12 + $0xa6c] ss:$16 sps:$4 sm:$0xff]  }
 0x2c3   : > { %3994 = vmatpush1.bf16.msra.mxu0 %v5831_v1  ;;  %4322 = vmatpush1.bf16.msra.mxu1 %v5834_v2  ;;  %v5923_v1 = vld [vmem:[%s6666_s12 + $0xa60] ss:$16 sps:$4 sm:$0xff]   ;;  %v5926_v2 = vld [vmem:[%s6666_s12 + $0xa68] ss:$16 sps:$4 sm:$0xff]  }
 0x2c4   : > { %3995 = vmatprep.subr.bf16.mxu0 %v5839_v3  ;;  %4323 = vmatprep.subr.bf16.mxu1 %v5842_v4  ;;  %v5931_v3 = vld [vmem:[%s6666_s12 + $0xa84] ss:$16 sps:$4 sm:$0xff]   ;;  %v5934_v4 = vld [vmem:[%s6666_s12 + $0xa8c] ss:$16 sps:$4 sm:$0xff]  }
 0x2c7   : > { %3996 = vmatpush1.bf16.msra.mxu0 %v5837_v5  ;;  %4324 = vmatpush1.bf16.msra.mxu1 %v5840_v6  ;;  %v5929_v5 = vld [vmem:[%s6666_s12 + $0xa80] ss:$16 sps:$4 sm:$0xff]   ;;  %v5932_v6 = vld [vmem:[%s6666_s12 + $0xa88] ss:$16 sps:$4 sm:$0xff]  }
 0x2c8   : > { %3997 = vmatprep.subr.bf16.mxu0 %v5845_v7  ;;  %4325 = vmatprep.subr.bf16.mxu1 %v5848_v8  ;;  %v5937_v7 = vld [vmem:[%s6666_s12 + $0xaa4] ss:$16 sps:$4 sm:$0xff]   ;;  %v5940_v8 = vld [vmem:[%s6666_s12 + $0xaac] ss:$16 sps:$4 sm:$0xff]  }
 0x2cb   : > { %3998 = vmatpush1.bf16.msra.mxu0 %v5843_v9  ;;  %4326 = vmatpush1.bf16.msra.mxu1 %v5846_v10  ;;  %v5935_v9 = vld [vmem:[%s6666_s12 + $0xaa0] ss:$16 sps:$4 sm:$0xff]   ;;  %v5938_v10 = vld [vmem:[%s6666_s12 + $0xaa8] ss:$16 sps:$4 sm:$0xff]  }
 0x2cc   : > { %3999 = vmatprep.subr.bf16.mxu0 %v5851_v11  ;;  %4327 = vmatprep.subr.bf16.mxu1 %v5854_v12  ;;  %v5943_v11 = vld [vmem:[%s6666_s12 + $0xac4] ss:$16 sps:$4 sm:$0xff]   ;;  %v5946_v12 = vld [vmem:[%s6666_s12 + $0xacc] ss:$16 sps:$4 sm:$0xff]  }
 0x2cf   : > { %4000 = vmatpush1.bf16.msra.mxu0 %v5849_v13  ;;  %4328 = vmatpush1.bf16.msra.mxu1 %v5852_v14  ;;  %v5941_v13 = vld [vmem:[%s6666_s12 + $0xac0] ss:$16 sps:$4 sm:$0xff]   ;;  %v5944_v14 = vld [vmem:[%s6666_s12 + $0xac8] ss:$16 sps:$4 sm:$0xff]  }
 0x2d0   : > { %4001 = vmatprep.subr.bf16.mxu0 %v5857_v15  ;;  %4329 = vmatprep.subr.bf16.mxu1 %v5860_v16  ;;  %v5949_v15 = vld [vmem:[%s6666_s12 + $0xae4] ss:$16 sps:$4 sm:$0xff]   ;;  %v5952_v16 = vld [vmem:[%s6666_s12 + $0xaec] ss:$16 sps:$4 sm:$0xff]  }
 0x2d3   : > { %4002 = vmatpush1.bf16.msra.mxu0 %v5855_v17  ;;  %4330 = vmatpush1.bf16.msra.mxu1 %v5858_v18  ;;  %v5947_v17 = vld [vmem:[%s6666_s12 + $0xae0] ss:$16 sps:$4 sm:$0xff]   ;;  %v5950_v18 = vld [vmem:[%s6666_s12 + $0xae8] ss:$16 sps:$4 sm:$0xff]  }
 0x2d4   : > { %4003 = vmatprep.subr.bf16.mxu0 %v5863_v19  ;;  %4331 = vmatprep.subr.bf16.mxu1 %v5866_v20  ;;  %v5955_v19 = vld [vmem:[%s6666_s12 + $0xb04] ss:$16 sps:$4 sm:$0xff]   ;;  %v5958_v20 = vld [vmem:[%s6666_s12 + $0xb0c] ss:$16 sps:$4 sm:$0xff]  }
 0x2d7   : > { %4004 = vmatpush1.bf16.msra.mxu0 %v5861_v21  ;;  %4332 = vmatpush1.bf16.msra.mxu1 %v5864_v22  ;;  %v5953_v21 = vld [vmem:[%s6666_s12 + $0xb00] ss:$16 sps:$4 sm:$0xff]   ;;  %v5956_v22 = vld [vmem:[%s6666_s12 + $0xb08] ss:$16 sps:$4 sm:$0xff]  }
 0x2d8   : > { %4005 = vmatprep.subr.bf16.mxu0 %v5869_v23  ;;  %4333 = vmatprep.subr.bf16.mxu1 %v5872_v24  ;;  %v5961_v23 = vld [vmem:[%s6666_s12 + $0xb24] ss:$16 sps:$4 sm:$0xff]   ;;  %v5964_v24 = vld [vmem:[%s6666_s12 + $0xb2c] ss:$16 sps:$4 sm:$0xff]  }
 0x2db   : > { %4006 = vmatpush1.bf16.msra.mxu0 %v5867_v25  ;;  %4334 = vmatpush1.bf16.msra.mxu1 %v5870_v26  ;;  %v5959_v25 = vld [vmem:[%s6666_s12 + $0xb20] ss:$16 sps:$4 sm:$0xff]   ;;  %v5962_v26 = vld [vmem:[%s6666_s12 + $0xb28] ss:$16 sps:$4 sm:$0xff]  }
 0x2dc   : > { %4007 = vmatprep.subr.bf16.mxu0 %v5875_v27  ;;  %4335 = vmatprep.subr.bf16.mxu1 %v5878_v28  ;;  %v5967_v27 = vld [vmem:[%s6666_s12 + $0xb44] ss:$16 sps:$4 sm:$0xff]   ;;  %v5970_v28 = vld [vmem:[%s6666_s12 + $0xb4c] ss:$16 sps:$4 sm:$0xff]  }
 0x2df   : > { %4008 = vmatpush1.bf16.msra.mxu0 %v5873_v29  ;;  %4336 = vmatpush1.bf16.msra.mxu1 %v5876_v30  ;;  %v5965_v29 = vld [vmem:[%s6666_s12 + $0xb40] ss:$16 sps:$4 sm:$0xff]   ;;  %v5968_v30 = vld [vmem:[%s6666_s12 + $0xb48] ss:$16 sps:$4 sm:$0xff]  }
 0x2e0   : > { %4009 = vmatprep.subr.bf16.mxu0 %v5881_v31  ;;  %4337 = vmatprep.subr.bf16.mxu1 %v5884_v32  ;;  %v5973_v31 = vld [vmem:[%s6666_s12 + $0xb64] ss:$16 sps:$4 sm:$0xff]   ;;  %v5976_v32 = vld [vmem:[%s6666_s12 + $0xb6c] ss:$16 sps:$4 sm:$0xff]  }
 0x2e3   : > { %4010 = vmatpush1.bf16.msra.mxu0 %v5879_v33  ;;  %4338 = vmatpush1.bf16.msra.mxu1 %v5882_v34  ;;  %v5971_v33 = vld [vmem:[%s6666_s12 + $0xb60] ss:$16 sps:$4 sm:$0xff]   ;;  %v5974_v34 = vld [vmem:[%s6666_s12 + $0xb68] ss:$16 sps:$4 sm:$0xff]  }
 0x2e4   : > { %4011 = vmatprep.subr.bf16.mxu0 %v5887_v35  ;;  %4339 = vmatprep.subr.bf16.mxu1 %v5890_v36  ;;  %v5979_v35 = vld [vmem:[%s6666_s12 + $0xb84] ss:$16 sps:$4 sm:$0xff]   ;;  %v5982_v36 = vld [vmem:[%s6666_s12 + $0xb8c] ss:$16 sps:$4 sm:$0xff]  }
 0x2e7   : > { %4012 = vmatpush1.bf16.msra.mxu0 %v5885_v37  ;;  %4340 = vmatpush1.bf16.msra.mxu1 %v5888_v38  ;;  %v5977_v37 = vld [vmem:[%s6666_s12 + $0xb80] ss:$16 sps:$4 sm:$0xff]   ;;  %v5980_v38 = vld [vmem:[%s6666_s12 + $0xb88] ss:$16 sps:$4 sm:$0xff]  }
 0x2e8   : > { %4013 = vmatprep.subr.bf16.mxu0 %v5893_v39  ;;  %4341 = vmatprep.subr.bf16.mxu1 %v5896_v40  ;;  %v5985_v39 = vld [vmem:[%s6666_s12 + $0xba4] ss:$16 sps:$4 sm:$0xff]   ;;  %v5988_v40 = vld [vmem:[%s6666_s12 + $0xbac] ss:$16 sps:$4 sm:$0xff]  }
 0x2eb   : > { %4014 = vmatpush1.bf16.msra.mxu0 %v5891_v42  ;;  %4342 = vmatpush1.bf16.msra.mxu1 %v5894_v43  ;;  %v5983_v42 = vld [vmem:[%s6666_s12 + $0xba0] ss:$16 sps:$4 sm:$0xff]   ;;  %v5986_v43 = vld [vmem:[%s6666_s12 + $0xba8] ss:$16 sps:$4 sm:$0xff]  }
 0x2ec   : > { %4015 = vmatprep.subr.bf16.mxu0 %v5899_v44  ;;  %4343 = vmatprep.subr.bf16.mxu1 %v5902_v46  ;;  %v5991_v44 = vld [vmem:[%s6666_s12 + $0xbc4] ss:$16 sps:$4 sm:$0xff]   ;;  %v5994_v46 = vld [vmem:[%s6666_s12 + $0xbcc] ss:$16 sps:$4 sm:$0xff]  }
 0x2ef   : > { %4016 = vmatpush1.bf16.msra.mxu0 %v5897_v47  ;;  %4344 = vmatpush1.bf16.msra.mxu1 %v5900_v48  ;;  %v5989_v47 = vld [vmem:[%s6666_s12 + $0xbc0] ss:$16 sps:$4 sm:$0xff]   ;;  %v5992_v48 = vld [vmem:[%s6666_s12 + $0xbc8] ss:$16 sps:$4 sm:$0xff]  }
 0x2f0   : > { %4026 = vmatprep.subr.bf16.mxu0 %v5906_v50  ;;  %4354 = vmatprep.subr.bf16.mxu1 %v5909_v41  ;;  %v5997_v50 = vld [vmem:[%s6666_s12 + $0xbe4] ss:$16 sps:$4 sm:$0xff]   ;;  %v6000_v41 = vld [vmem:[%s6666_s12 + $0xbec] ss:$16 sps:$4 sm:$0xff]  }
 0x2f2   : > { %4018 = vmatmul.mubr.bf16.vlgmr.msra.gmra.mrb[0].mxu0 %v4708_v52  ;;  %4346 = vmatmul.mubr.bf16.vlgmr.msra.gmra.mrb[0].mxu1 %v4708_v52  ;;  %v5995_v52 = vld [vmem:[%s6666_s12 + $0xbe0] ss:$16 sps:$4 sm:$0xff]  }
 0x2f3   : > { %4027 = vmatpush1.bf16.msra.mxu0 %v5904_v45  ;;  %4355 = vmatpush1.bf16.msra.mxu1 %v5907_v53  ;;  %v5998_v45 = vld [vmem:[%s6666_s12 + $0xbe8] ss:$16 sps:$4 sm:$0xff]   ;;  %v6004_v53 = vld [vmem:[%s6666_s12 + $0xc04] ss:$16 sps:$4 sm:$0xff]  }
 0x2f4   : > { %4028 = vmatprep.subr.bf16.mxu0 %v5913_v54  ;;  %4356 = vmatprep.subr.bf16.mxu1 %v5916_v55  ;;  %v6007_v54 = vld [vmem:[%s6666_s12 + $0xc0c] ss:$16 sps:$4 sm:$0xff]   ;;  %v4710_v55 = vcombine.low %v7103_v51, %v7103_v51  ;;  %v6009_v51 = vld [vmem:[%s6666_s12 + $0xc20] ss:$16 sps:$4 sm:$0xff]  }
 0x2f5   : > { %4058 = vmatprep.mubr.bf16.mxu0 %v4711_v56  ;;  %4386 = vmatprep.mubr.bf16.mxu1 %v4711_v56  ;;  %v7176_v56 = vld [vmem:[%s6797_s22 + $0x30] sm:$0xff] }
 0x2f7   : > { %4029 = vmatpush1.bf16.msra.mxu0 %v5911_v49  ;;  %4357 = vmatpush1.bf16.msra.mxu1 %v5914_v57  ;;  %v6002_v49 = vld [vmem:[%s6666_s12 + $0xc00] ss:$16 sps:$4 sm:$0xff]   ;;  %v6005_v57 = vld [vmem:[%s6666_s12 + $0xc08] ss:$16 sps:$4 sm:$0xff]  }
 0x2f8   : > { %4030 = vmatprep.subr.bf16.mxu0 %v5919_v58  ;;  %4358 = vmatprep.subr.bf16.mxu1 %v5922_v59  ;;  %v6011_v58 = vld [vmem:[%s6666_s12 + $0xc24] ss:$16 sps:$4 sm:$0xff]   ;;  %v6014_v59 = vld [vmem:[%s6666_s12 + $0xc2c] ss:$16 sps:$4 sm:$0xff]  }
 0x2fb   : > { %4031 = vmatpush1.bf16.msra.mxu0 %v5917_v60  ;;  %4359 = vmatpush1.bf16.msra.mxu1 %v5920_v61  ;;  %v4713_v60 = vcombine.high %v7176_v56, %v7176_v56  ;;  %v6012_v61 = vld [vmem:[%s6666_s12 + $0xc28] ss:$16 sps:$4 sm:$0xff]  }
 0x2fc   : > { %4032 = vmatprep.subr.bf16.mxu0 %v5925_v62  ;;  %4360 = vmatprep.subr.bf16.mxu1 %v5928_v63  ;;  %v6017_v62 = vld [vmem:[%s6666_s12 + $0xc44] ss:$16 sps:$4 sm:$0xff]   ;;  %v6020_v63 = vld [vmem:[%s6666_s12 + $0xc4c] ss:$16 sps:$4 sm:$0xff]  }
 0x2ff   : > { %4033 = vmatpush1.bf16.msra.mxu0 %v5923_v1  ;;  %4361 = vmatpush1.bf16.msra.mxu1 %v5926_v2  ;;  %v6015_v1 = vld [vmem:[%s6666_s12 + $0xc40] ss:$16 sps:$4 sm:$0xff]   ;;  %v6018_v2 = vld [vmem:[%s6666_s12 + $0xc48] ss:$16 sps:$4 sm:$0xff]  }
 0x300   : > { %4034 = vmatprep.subr.bf16.mxu0 %v5931_v3  ;;  %4362 = vmatprep.subr.bf16.mxu1 %v5934_v4  ;;  %v6023_v3 = vld [vmem:[%s6666_s12 + $0xc64] ss:$16 sps:$4 sm:$0xff]   ;;  %v6026_v4 = vld [vmem:[%s6666_s12 + $0xc6c] ss:$16 sps:$4 sm:$0xff]  }
 0x303   : > { %4035 = vmatpush1.bf16.msra.mxu0 %v5929_v5  ;;  %4363 = vmatpush1.bf16.msra.mxu1 %v5932_v6  ;;  %v6021_v5 = vld [vmem:[%s6666_s12 + $0xc60] ss:$16 sps:$4 sm:$0xff]   ;;  %v6024_v6 = vld [vmem:[%s6666_s12 + $0xc68] ss:$16 sps:$4 sm:$0xff]  }
 0x304   : > { %4036 = vmatprep.subr.bf16.mxu0 %v5937_v7  ;;  %4364 = vmatprep.subr.bf16.mxu1 %v5940_v8  ;;  %v6029_v7 = vld [vmem:[%s6666_s12 + $0xc84] ss:$16 sps:$4 sm:$0xff]   ;;  %v6032_v8 = vld [vmem:[%s6666_s12 + $0xc8c] ss:$16 sps:$4 sm:$0xff]  }
 0x307   : > { %4037 = vmatpush1.bf16.msra.mxu0 %v5935_v9  ;;  %4365 = vmatpush1.bf16.msra.mxu1 %v5938_v10  ;;  %v6027_v9 = vld [vmem:[%s6666_s12 + $0xc80] ss:$16 sps:$4 sm:$0xff]   ;;  %v6030_v10 = vld [vmem:[%s6666_s12 + $0xc88] ss:$16 sps:$4 sm:$0xff]  }
 0x308   : > { %4038 = vmatprep.subr.bf16.mxu0 %v5943_v11  ;;  %4366 = vmatprep.subr.bf16.mxu1 %v5946_v12  ;;  %v6035_v11 = vld [vmem:[%s6666_s12 + $0xca4] ss:$16 sps:$4 sm:$0xff]   ;;  %v6038_v12 = vld [vmem:[%s6666_s12 + $0xcac] ss:$16 sps:$4 sm:$0xff]  }
 0x30b   : > { %4039 = vmatpush1.bf16.msra.mxu0 %v5941_v13  ;;  %4367 = vmatpush1.bf16.msra.mxu1 %v5944_v14  ;;  %v6033_v13 = vld [vmem:[%s6666_s12 + $0xca0] ss:$16 sps:$4 sm:$0xff]   ;;  %v6036_v14 = vld [vmem:[%s6666_s12 + $0xca8] ss:$16 sps:$4 sm:$0xff]  }
 0x30c   : > { %4040 = vmatprep.subr.bf16.mxu0 %v5949_v15  ;;  %4368 = vmatprep.subr.bf16.mxu1 %v5952_v16  ;;  %v6041_v15 = vld [vmem:[%s6666_s12 + $0xcc4] ss:$16 sps:$4 sm:$0xff]   ;;  %v6044_v16 = vld [vmem:[%s6666_s12 + $0xccc] ss:$16 sps:$4 sm:$0xff]  }
 0x30f   : > { %4041 = vmatpush1.bf16.msra.mxu0 %v5947_v17  ;;  %4369 = vmatpush1.bf16.msra.mxu1 %v5950_v18  ;;  %v6039_v17 = vld [vmem:[%s6666_s12 + $0xcc0] ss:$16 sps:$4 sm:$0xff]   ;;  %v6042_v18 = vld [vmem:[%s6666_s12 + $0xcc8] ss:$16 sps:$4 sm:$0xff]  }
 0x310   : > { %4042 = vmatprep.subr.bf16.mxu0 %v5955_v19  ;;  %4370 = vmatprep.subr.bf16.mxu1 %v5958_v20  ;;  %v6047_v19 = vld [vmem:[%s6666_s12 + $0xce4] ss:$16 sps:$4 sm:$0xff]   ;;  %v6050_v20 = vld [vmem:[%s6666_s12 + $0xcec] ss:$16 sps:$4 sm:$0xff]  }
 0x313   : > { %4043 = vmatpush1.bf16.msra.mxu0 %v5953_v21  ;;  %4371 = vmatpush1.bf16.msra.mxu1 %v5956_v22  ;;  %v6045_v21 = vld [vmem:[%s6666_s12 + $0xce0] ss:$16 sps:$4 sm:$0xff]   ;;  %v6048_v22 = vld [vmem:[%s6666_s12 + $0xce8] ss:$16 sps:$4 sm:$0xff]  }
 0x314   : > { %4044 = vmatprep.subr.bf16.mxu0 %v5961_v23  ;;  %4372 = vmatprep.subr.bf16.mxu1 %v5964_v24  ;;  %v6053_v23 = vld [vmem:[%s6666_s12 + $0xd04] ss:$16 sps:$4 sm:$0xff]   ;;  %v6056_v24 = vld [vmem:[%s6666_s12 + $0xd0c] ss:$16 sps:$4 sm:$0xff]  }
 0x317   : > { %4045 = vmatpush1.bf16.msra.mxu0 %v5959_v25  ;;  %4373 = vmatpush1.bf16.msra.mxu1 %v5962_v26  ;;  %v6051_v25 = vld [vmem:[%s6666_s12 + $0xd00] ss:$16 sps:$4 sm:$0xff]   ;;  %v6054_v26 = vld [vmem:[%s6666_s12 + $0xd08] ss:$16 sps:$4 sm:$0xff]  }
 0x318   : > { %4046 = vmatprep.subr.bf16.mxu0 %v5967_v27  ;;  %4374 = vmatprep.subr.bf16.mxu1 %v5970_v28  ;;  %v6059_v27 = vld [vmem:[%s6666_s12 + $0xd24] ss:$16 sps:$4 sm:$0xff]   ;;  %v6062_v28 = vld [vmem:[%s6666_s12 + $0xd2c] ss:$16 sps:$4 sm:$0xff]  }
 0x31b   : > { %4047 = vmatpush1.bf16.msra.mxu0 %v5965_v29  ;;  %4375 = vmatpush1.bf16.msra.mxu1 %v5968_v30  ;;  %v6057_v29 = vld [vmem:[%s6666_s12 + $0xd20] ss:$16 sps:$4 sm:$0xff]   ;;  %v6060_v30 = vld [vmem:[%s6666_s12 + $0xd28] ss:$16 sps:$4 sm:$0xff]  }
 0x31c   : > { %4048 = vmatprep.subr.bf16.mxu0 %v5973_v31  ;;  %4376 = vmatprep.subr.bf16.mxu1 %v5976_v32  ;;  %v6065_v31 = vld [vmem:[%s6666_s12 + $0xd44] ss:$16 sps:$4 sm:$0xff]   ;;  %v6068_v32 = vld [vmem:[%s6666_s12 + $0xd4c] ss:$16 sps:$4 sm:$0xff]  }
 0x31f   : > { %4049 = vmatpush1.bf16.msra.mxu0 %v5971_v33  ;;  %4377 = vmatpush1.bf16.msra.mxu1 %v5974_v34  ;;  %v6063_v33 = vld [vmem:[%s6666_s12 + $0xd40] ss:$16 sps:$4 sm:$0xff]   ;;  %v6066_v34 = vld [vmem:[%s6666_s12 + $0xd48] ss:$16 sps:$4 sm:$0xff]  }
 0x320   : > { %4050 = vmatprep.subr.bf16.mxu0 %v5979_v35  ;;  %4378 = vmatprep.subr.bf16.mxu1 %v5982_v36  ;;  %v6071_v35 = vld [vmem:[%s6666_s12 + $0xd64] ss:$16 sps:$4 sm:$0xff]   ;;  %v6074_v36 = vld [vmem:[%s6666_s12 + $0xd6c] ss:$16 sps:$4 sm:$0xff]  }
 0x323   : > { %4051 = vmatpush1.bf16.msra.mxu0 %v5977_v37  ;;  %4379 = vmatpush1.bf16.msra.mxu1 %v5980_v38  ;;  %v6069_v37 = vld [vmem:[%s6666_s12 + $0xd60] ss:$16 sps:$4 sm:$0xff]   ;;  %v6072_v38 = vld [vmem:[%s6666_s12 + $0xd68] ss:$16 sps:$4 sm:$0xff]  }
 0x324   : > { %4052 = vmatprep.subr.bf16.mxu0 %v5985_v39  ;;  %4380 = vmatprep.subr.bf16.mxu1 %v5988_v40  ;;  %v6077_v39 = vld [vmem:[%s6666_s12 + $0xd84] ss:$16 sps:$4 sm:$0xff]   ;;  %v6080_v40 = vld [vmem:[%s6666_s12 + $0xd8c] ss:$16 sps:$4 sm:$0xff]  }
 0x327   : > { %4053 = vmatpush1.bf16.msra.mxu0 %v5983_v42  ;;  %4381 = vmatpush1.bf16.msra.mxu1 %v5986_v43  ;;  %v6075_v42 = vld [vmem:[%s6666_s12 + $0xd80] ss:$16 sps:$4 sm:$0xff]   ;;  %v6078_v43 = vld [vmem:[%s6666_s12 + $0xd88] ss:$16 sps:$4 sm:$0xff]  }
 0x328   : > { %4054 = vmatprep.subr.bf16.mxu0 %v5991_v44  ;;  %4382 = vmatprep.subr.bf16.mxu1 %v5994_v46  ;;  %v6083_v44 = vld [vmem:[%s6666_s12 + $0xda4] ss:$16 sps:$4 sm:$0xff]   ;;  %v6086_v46 = vld [vmem:[%s6666_s12 + $0xdac] ss:$16 sps:$4 sm:$0xff]  }
 0x32b   : > { %4055 = vmatpush1.bf16.msra.mxu0 %v5989_v47  ;;  %4383 = vmatpush1.bf16.msra.mxu1 %v5992_v48  ;;  %v6081_v47 = vld [vmem:[%s6666_s12 + $0xda0] ss:$16 sps:$4 sm:$0xff]   ;;  %v6084_v48 = vld [vmem:[%s6666_s12 + $0xda8] ss:$16 sps:$4 sm:$0xff]  }
 0x32c   : > { %4056 = vmatprep.subr.bf16.mxu0 %v5997_v50  ;;  %4384 = vmatprep.subr.bf16.mxu1 %v6000_v41  ;;  %v6089_v50 = vld [vmem:[%s6666_s12 + $0xdc4] ss:$16 sps:$4 sm:$0xff]   ;;  %v6092_v41 = vld [vmem:[%s6666_s12 + $0xdcc] ss:$16 sps:$4 sm:$0xff]  }
 0x32f   : > { %4057 = vmatpush1.bf16.msra.mxu0 %v5995_v52  ;;  %4385 = vmatpush1.bf16.msra.mxu1 %v5998_v45  ;;  %v6087_v52 = vld [vmem:[%s6666_s12 + $0xdc0] ss:$16 sps:$4 sm:$0xff]   ;;  %v6090_v45 = vld [vmem:[%s6666_s12 + $0xdc8] ss:$16 sps:$4 sm:$0xff]  }
 0x330   : > { %4067 = vmatprep.subr.bf16.mxu0 %v6004_v53  ;;  %4395 = vmatprep.subr.bf16.mxu1 %v6007_v54  ;;  %v6095_v53 = vld [vmem:[%s6666_s12 + $0xde4] ss:$16 sps:$4 sm:$0xff]   ;;  %v6098_v54 = vld [vmem:[%s6666_s12 + $0xdec] ss:$16 sps:$4 sm:$0xff]  }
 0x332   : > { %4059 = vmatmul.mubr.bf16.vlgmr.msra.gmra.mrb[0].mxu0 %v4710_v55  ;;  %4387 = vmatmul.mubr.bf16.vlgmr.msra.gmra.mrb[0].mxu1 %v4710_v55  ;;  %v6093_v55 = vld [vmem:[%s6666_s12 + $0xde0] ss:$16 sps:$4 sm:$0xff]  }
 0x333   : > { %4068 = vmatpush1.bf16.msra.mxu0 %v6002_v49  ;;  %4396 = vmatpush1.bf16.msra.mxu1 %v6005_v57  ;;  %v6096_v49 = vld [vmem:[%s6666_s12 + $0xde8] ss:$16 sps:$4 sm:$0xff]   ;;  %v6102_v57 = vld [vmem:[%s6666_s12 + $0xe04] ss:$16 sps:$4 sm:$0xff]  }
 0x334   : > { %4069 = vmatprep.subr.bf16.mxu0 %v6011_v58  ;;  %4397 = vmatprep.subr.bf16.mxu1 %v6014_v59  ;;  %v6105_v58 = vld [vmem:[%s6666_s12 + $0xe0c] ss:$16 sps:$4 sm:$0xff]   ;;  %v4712_v59 = vcombine.low %v7176_v56, %v7176_v56  ;;  %v6107_v56 = vld [vmem:[%s6666_s12 + $0xe20] ss:$16 sps:$4 sm:$0xff]  }
 0x335   : > { %4099 = vmatprep.mubr.bf16.mxu0 %v4713_v60  ;;  %4427 = vmatprep.mubr.bf16.mxu1 %v4713_v60  ;;  %v7247_v60 = vld [vmem:[%s6797_s22 + $0x38] sm:$0xff] }
 0x337   : > { %4070 = vmatpush1.bf16.msra.mxu0 %v6009_v51  ;;  %4398 = vmatpush1.bf16.msra.mxu1 %v6012_v61  ;;  %v6100_v51 = vld [vmem:[%s6666_s12 + $0xe00] ss:$16 sps:$4 sm:$0xff]   ;;  %v6103_v61 = vld [vmem:[%s6666_s12 + $0xe08] ss:$16 sps:$4 sm:$0xff]  }
 0x338   : > { %4071 = vmatprep.subr.bf16.mxu0 %v6017_v62  ;;  %4399 = vmatprep.subr.bf16.mxu1 %v6020_v63  ;;  %v6109_v62 = vld [vmem:[%s6666_s12 + $0xe24] ss:$16 sps:$4 sm:$0xff]   ;;  %v6112_v63 = vld [vmem:[%s6666_s12 + $0xe2c] ss:$16 sps:$4 sm:$0xff]  }
 0x33b   : > { %4072 = vmatpush1.bf16.msra.mxu0 %v6015_v1  ;;  %4400 = vmatpush1.bf16.msra.mxu1 %v6018_v2  ;;  %v4715_v1 = vcombine.high %v7247_v60, %v7247_v60  ;;  %v6110_v2 = vld [vmem:[%s6666_s12 + $0xe28] ss:$16 sps:$4 sm:$0xff]  }
 0x33c   : > { %4073 = vmatprep.subr.bf16.mxu0 %v6023_v3  ;;  %4401 = vmatprep.subr.bf16.mxu1 %v6026_v4  ;;  %v6115_v3 = vld [vmem:[%s6666_s12 + $0xe44] ss:$16 sps:$4 sm:$0xff]   ;;  %v6118_v4 = vld [vmem:[%s6666_s12 + $0xe4c] ss:$16 sps:$4 sm:$0xff]  }
 0x33f   : > { %4074 = vmatpush1.bf16.msra.mxu0 %v6021_v5  ;;  %4402 = vmatpush1.bf16.msra.mxu1 %v6024_v6  ;;  %v6113_v5 = vld [vmem:[%s6666_s12 + $0xe40] ss:$16 sps:$4 sm:$0xff]   ;;  %v6116_v6 = vld [vmem:[%s6666_s12 + $0xe48] ss:$16 sps:$4 sm:$0xff]  }
 0x340   : > { %4075 = vmatprep.subr.bf16.mxu0 %v6029_v7  ;;  %4403 = vmatprep.subr.bf16.mxu1 %v6032_v8  ;;  %v6121_v7 = vld [vmem:[%s6666_s12 + $0xe64] ss:$16 sps:$4 sm:$0xff]   ;;  %v6124_v8 = vld [vmem:[%s6666_s12 + $0xe6c] ss:$16 sps:$4 sm:$0xff]  }
 0x343   : > { %4076 = vmatpush1.bf16.msra.mxu0 %v6027_v9  ;;  %4404 = vmatpush1.bf16.msra.mxu1 %v6030_v10  ;;  %v6119_v9 = vld [vmem:[%s6666_s12 + $0xe60] ss:$16 sps:$4 sm:$0xff]   ;;  %v6122_v10 = vld [vmem:[%s6666_s12 + $0xe68] ss:$16 sps:$4 sm:$0xff]  }
 0x344   : > { %4077 = vmatprep.subr.bf16.mxu0 %v6035_v11  ;;  %4405 = vmatprep.subr.bf16.mxu1 %v6038_v12  ;;  %v6127_v11 = vld [vmem:[%s6666_s12 + $0xe84] ss:$16 sps:$4 sm:$0xff]   ;;  %v6130_v12 = vld [vmem:[%s6666_s12 + $0xe8c] ss:$16 sps:$4 sm:$0xff]  }
 0x347   : > { %4078 = vmatpush1.bf16.msra.mxu0 %v6033_v13  ;;  %4406 = vmatpush1.bf16.msra.mxu1 %v6036_v14  ;;  %v6125_v13 = vld [vmem:[%s6666_s12 + $0xe80] ss:$16 sps:$4 sm:$0xff]   ;;  %v6128_v14 = vld [vmem:[%s6666_s12 + $0xe88] ss:$16 sps:$4 sm:$0xff]  }
 0x348   : > { %4079 = vmatprep.subr.bf16.mxu0 %v6041_v15  ;;  %4407 = vmatprep.subr.bf16.mxu1 %v6044_v16  ;;  %v6133_v15 = vld [vmem:[%s6666_s12 + $0xea4] ss:$16 sps:$4 sm:$0xff]   ;;  %v6136_v16 = vld [vmem:[%s6666_s12 + $0xeac] ss:$16 sps:$4 sm:$0xff]  }
 0x34b   : > { %4080 = vmatpush1.bf16.msra.mxu0 %v6039_v17  ;;  %4408 = vmatpush1.bf16.msra.mxu1 %v6042_v18  ;;  %v6131_v17 = vld [vmem:[%s6666_s12 + $0xea0] ss:$16 sps:$4 sm:$0xff]   ;;  %v6134_v18 = vld [vmem:[%s6666_s12 + $0xea8] ss:$16 sps:$4 sm:$0xff]  }
 0x34c   : > { %4081 = vmatprep.subr.bf16.mxu0 %v6047_v19  ;;  %4409 = vmatprep.subr.bf16.mxu1 %v6050_v20  ;;  %v6139_v19 = vld [vmem:[%s6666_s12 + $0xec4] ss:$16 sps:$4 sm:$0xff]   ;;  %v6142_v20 = vld [vmem:[%s6666_s12 + $0xecc] ss:$16 sps:$4 sm:$0xff]  }
 0x34f   : > { %4082 = vmatpush1.bf16.msra.mxu0 %v6045_v21  ;;  %4410 = vmatpush1.bf16.msra.mxu1 %v6048_v22  ;;  %v6137_v21 = vld [vmem:[%s6666_s12 + $0xec0] ss:$16 sps:$4 sm:$0xff]   ;;  %v6140_v22 = vld [vmem:[%s6666_s12 + $0xec8] ss:$16 sps:$4 sm:$0xff]  }
 0x350   : > { %4083 = vmatprep.subr.bf16.mxu0 %v6053_v23  ;;  %4411 = vmatprep.subr.bf16.mxu1 %v6056_v24  ;;  %v6145_v23 = vld [vmem:[%s6666_s12 + $0xee4] ss:$16 sps:$4 sm:$0xff]   ;;  %v6148_v24 = vld [vmem:[%s6666_s12 + $0xeec] ss:$16 sps:$4 sm:$0xff]  }
 0x353   : > { %4084 = vmatpush1.bf16.msra.mxu0 %v6051_v25  ;;  %4412 = vmatpush1.bf16.msra.mxu1 %v6054_v26  ;;  %v6143_v25 = vld [vmem:[%s6666_s12 + $0xee0] ss:$16 sps:$4 sm:$0xff]   ;;  %v6146_v26 = vld [vmem:[%s6666_s12 + $0xee8] ss:$16 sps:$4 sm:$0xff]  }
 0x354   : > { %4085 = vmatprep.subr.bf16.mxu0 %v6059_v27  ;;  %4413 = vmatprep.subr.bf16.mxu1 %v6062_v28  ;;  %v6151_v27 = vld [vmem:[%s6666_s12 + $0xf04] ss:$16 sps:$4 sm:$0xff]   ;;  %v6154_v28 = vld [vmem:[%s6666_s12 + $0xf0c] ss:$16 sps:$4 sm:$0xff]  }
 0x357   : > { %4086 = vmatpush1.bf16.msra.mxu0 %v6057_v29  ;;  %4414 = vmatpush1.bf16.msra.mxu1 %v6060_v30  ;;  %v6149_v29 = vld [vmem:[%s6666_s12 + $0xf00] ss:$16 sps:$4 sm:$0xff]   ;;  %v6152_v30 = vld [vmem:[%s6666_s12 + $0xf08] ss:$16 sps:$4 sm:$0xff]  }
 0x358   : > { %4087 = vmatprep.subr.bf16.mxu0 %v6065_v31  ;;  %4415 = vmatprep.subr.bf16.mxu1 %v6068_v32  ;;  %v6157_v31 = vld [vmem:[%s6666_s12 + $0xf24] ss:$16 sps:$4 sm:$0xff]   ;;  %v6160_v32 = vld [vmem:[%s6666_s12 + $0xf2c] ss:$16 sps:$4 sm:$0xff]  }
 0x35b   : > { %4088 = vmatpush1.bf16.msra.mxu0 %v6063_v33  ;;  %4416 = vmatpush1.bf16.msra.mxu1 %v6066_v34  ;;  %v6155_v33 = vld [vmem:[%s6666_s12 + $0xf20] ss:$16 sps:$4 sm:$0xff]   ;;  %v6158_v34 = vld [vmem:[%s6666_s12 + $0xf28] ss:$16 sps:$4 sm:$0xff]  }
 0x35c   : > { %4089 = vmatprep.subr.bf16.mxu0 %v6071_v35  ;;  %4417 = vmatprep.subr.bf16.mxu1 %v6074_v36  ;;  %v6163_v35 = vld [vmem:[%s6666_s12 + $0xf44] ss:$16 sps:$4 sm:$0xff]   ;;  %v6166_v36 = vld [vmem:[%s6666_s12 + $0xf4c] ss:$16 sps:$4 sm:$0xff]  }
 0x35f   : > { %4090 = vmatpush1.bf16.msra.mxu0 %v6069_v37  ;;  %4418 = vmatpush1.bf16.msra.mxu1 %v6072_v38  ;;  %v6161_v37 = vld [vmem:[%s6666_s12 + $0xf40] ss:$16 sps:$4 sm:$0xff]   ;;  %v6164_v38 = vld [vmem:[%s6666_s12 + $0xf48] ss:$16 sps:$4 sm:$0xff]  }
 0x360   : > { %4091 = vmatprep.subr.bf16.mxu0 %v6077_v39  ;;  %4419 = vmatprep.subr.bf16.mxu1 %v6080_v40  ;;  %v6169_v39 = vld [vmem:[%s6666_s12 + $0xf64] ss:$16 sps:$4 sm:$0xff]   ;;  %v6172_v40 = vld [vmem:[%s6666_s12 + $0xf6c] ss:$16 sps:$4 sm:$0xff]  }
 0x363   : > { %4092 = vmatpush1.bf16.msra.mxu0 %v6075_v42  ;;  %4420 = vmatpush1.bf16.msra.mxu1 %v6078_v43  ;;  %v6167_v42 = vld [vmem:[%s6666_s12 + $0xf60] ss:$16 sps:$4 sm:$0xff]   ;;  %v6170_v43 = vld [vmem:[%s6666_s12 + $0xf68] ss:$16 sps:$4 sm:$0xff]  }
 0x364   : > { %4093 = vmatprep.subr.bf16.mxu0 %v6083_v44  ;;  %4421 = vmatprep.subr.bf16.mxu1 %v6086_v46  ;;  %v6175_v44 = vld [vmem:[%s6666_s12 + $0xf84] ss:$16 sps:$4 sm:$0xff]   ;;  %v6178_v46 = vld [vmem:[%s6666_s12 + $0xf8c] ss:$16 sps:$4 sm:$0xff]  }
 0x367   : > { %4094 = vmatpush1.bf16.msra.mxu0 %v6081_v47  ;;  %4422 = vmatpush1.bf16.msra.mxu1 %v6084_v48  ;;  %v6173_v47 = vld [vmem:[%s6666_s12 + $0xf80] ss:$16 sps:$4 sm:$0xff]   ;;  %v6176_v48 = vld [vmem:[%s6666_s12 + $0xf88] ss:$16 sps:$4 sm:$0xff]  }
 0x368   : > { %4095 = vmatprep.subr.bf16.mxu0 %v6089_v50  ;;  %4423 = vmatprep.subr.bf16.mxu1 %v6092_v41  ;;  %v6181_v50 = vld [vmem:[%s6666_s12 + $0xfa4] ss:$16 sps:$4 sm:$0xff]   ;;  %v6184_v41 = vld [vmem:[%s6666_s12 + $0xfac] ss:$16 sps:$4 sm:$0xff]  }
 0x36b   : > { %4096 = vmatpush1.bf16.msra.mxu0 %v6087_v52  ;;  %4424 = vmatpush1.bf16.msra.mxu1 %v6090_v45  ;;  %v6179_v52 = vld [vmem:[%s6666_s12 + $0xfa0] ss:$16 sps:$4 sm:$0xff]   ;;  %v6182_v45 = vld [vmem:[%s6666_s12 + $0xfa8] ss:$16 sps:$4 sm:$0xff]  }
 0x36c   : > { %4097 = vmatprep.subr.bf16.mxu0 %v6095_v53  ;;  %4425 = vmatprep.subr.bf16.mxu1 %v6098_v54  ;;  %v6187_v53 = vld [vmem:[%s6666_s12 + $0xfc4] ss:$16 sps:$4 sm:$0xff]   ;;  %v6190_v54 = vld [vmem:[%s6666_s12 + $0xfcc] ss:$16 sps:$4 sm:$0xff]  }
 0x36f   : > { %4098 = vmatpush1.bf16.msra.mxu0 %v6093_v55  ;;  %4426 = vmatpush1.bf16.msra.mxu1 %v6096_v49  ;;  %v6185_v55 = vld [vmem:[%s6666_s12 + $0xfc0] ss:$16 sps:$4 sm:$0xff]   ;;  %v6188_v49 = vld [vmem:[%s6666_s12 + $0xfc8] ss:$16 sps:$4 sm:$0xff]  }
 0x370   : > { %4108 = vmatprep.subr.bf16.mxu0 %v6102_v57  ;;  %4436 = vmatprep.subr.bf16.mxu1 %v6105_v58  ;;  %v6193_v57 = vld [vmem:[%s6666_s12 + $0xfe4] ss:$16 sps:$4 sm:$0xff]   ;;  %v6196_v58 = vld [vmem:[%s6666_s12 + $0xfec] ss:$16 sps:$4 sm:$0xff]  }
 0x372   : > { %4100 = vmatmul.mubr.bf16.vlgmr.msra.gmra.mrb[0].mxu0 %v4712_v59  ;;  %4428 = vmatmul.mubr.bf16.vlgmr.msra.gmra.mrb[0].mxu1 %v4712_v59  ;;  %v6191_v59 = vld [vmem:[%s6666_s12 + $0xfe0] ss:$16 sps:$4 sm:$0xff]  }
 0x373   : > { %4109 = vmatpush1.bf16.msra.mxu0 %v6100_v51  ;;  %4437 = vmatpush1.bf16.msra.mxu1 %v6103_v61  ;;  %v6194_v51 = vld [vmem:[%s6666_s12 + $0xfe8] ss:$16 sps:$4 sm:$0xff]   ;;  %v4714_v61 = vcombine.low %v7247_v60, %v7247_v60  ;;  %s4496_s12 = sadd.s32 %s5230_s15, %s4493_s4 }
 0x374   : > { %4110 = vmatprep.subr.bf16.mxu0 %v6109_v62  ;;  %4438 = vmatprep.subr.bf16.mxu1 %v6112_v63  ;;  %v1185_v62 = vlaneseq  ;;  %s5231_s21 = sshll.u32 %s4496_s12, 2 }
 0x375   : > { %4140 = vmatprep.mubr.bf16.mxu0 %v4715_v1  ;;  %4468 = vmatprep.mubr.bf16.mxu1 %v4715_v1  ;;  %s4498_s3 = scalar_lea.vmem [#allocation2], %s5231_s21 }
 0x376   : > { %v1186_v63 = vshrl.u32 %v1185_v62, 7 }
 0x377   : > { %4111 = vmatpush1.bf16.msra.mxu0 %v6107_v56  ;;  %4439 = vmatpush1.bf16.msra.mxu1 %v6110_v2 }
 0x378   : > { %4112 = vmatprep.subr.bf16.mxu0 %v6115_v3  ;;  %4440 = vmatprep.subr.bf16.mxu1 %v6118_v4  ;;  %v1187_v1 = vsub.s32 0, %v1186_v63  ;;  %v1195_v56 = vsub.s32 2, %v1186_v63  ;;  %v1191_v2 = vsub.s32 1, %v1186_v63  ;;  %v1199_v3 = vsub.s32 3, %v1186_v63 }
 0x37a   : > { %v1188_v4 = vrot.slane %v6687_v0, %v1187_v1  ;;  %v1192_v60 = vrot.slane %v6687_v0, %v1191_v2 }
 0x37b   : > { %4113 = vmatpush1.bf16.msra.mxu0 %v6113_v5  ;;  %4441 = vmatpush1.bf16.msra.mxu1 %v6116_v6  ;;  %v1196_v5 = vrot.slane %v6687_v0, %v1195_v56  ;;  %v1200_v6 = vrot.slane %v6687_v0, %v1199_v3 }
 0x37c   : > { %4114 = vmatprep.subr.bf16.mxu0 %v6121_v7  ;;  %4442 = vmatprep.subr.bf16.mxu1 %v6124_v8 }
 0x37f   : > { %4115 = vmatpush1.bf16.msra.mxu0 %v6119_v9  ;;  %4443 = vmatpush1.bf16.msra.mxu1 %v6122_v10 }
 0x380   : > { %4116 = vmatprep.subr.bf16.mxu0 %v6127_v11  ;;  %4444 = vmatprep.subr.bf16.mxu1 %v6130_v12 }
 0x383   : > { %4117 = vmatpush1.bf16.msra.mxu0 %v6125_v13  ;;  %4445 = vmatpush1.bf16.msra.mxu1 %v6128_v14 }
 0x384   : > { %4118 = vmatprep.subr.bf16.mxu0 %v6133_v15  ;;  %4446 = vmatprep.subr.bf16.mxu1 %v6136_v16 }
 0x387   : > { %4119 = vmatpush1.bf16.msra.mxu0 %v6131_v17  ;;  %4447 = vmatpush1.bf16.msra.mxu1 %v6134_v18 }
 0x388   : > { %4120 = vmatprep.subr.bf16.mxu0 %v6139_v19  ;;  %4448 = vmatprep.subr.bf16.mxu1 %v6142_v20 }
 0x38b   : > { %4121 = vmatpush1.bf16.msra.mxu0 %v6137_v21  ;;  %4449 = vmatpush1.bf16.msra.mxu1 %v6140_v22 }
 0x38c   : > { %4122 = vmatprep.subr.bf16.mxu0 %v6145_v23  ;;  %4450 = vmatprep.subr.bf16.mxu1 %v6148_v24 }
 0x38f   : > { %4123 = vmatpush1.bf16.msra.mxu0 %v6143_v25  ;;  %4451 = vmatpush1.bf16.msra.mxu1 %v6146_v26 }
 0x390   : > { %4124 = vmatprep.subr.bf16.mxu0 %v6151_v27  ;;  %4452 = vmatprep.subr.bf16.mxu1 %v6154_v28 }
 0x393   : > { %4125 = vmatpush1.bf16.msra.mxu0 %v6149_v29  ;;  %4453 = vmatpush1.bf16.msra.mxu1 %v6152_v30 }
 0x394   : > { %4126 = vmatprep.subr.bf16.mxu0 %v6157_v31  ;;  %4454 = vmatprep.subr.bf16.mxu1 %v6160_v32 }
 0x397   : > { %4127 = vmatpush1.bf16.msra.mxu0 %v6155_v33  ;;  %4455 = vmatpush1.bf16.msra.mxu1 %v6158_v34 }
 0x398   : > { %4128 = vmatprep.subr.bf16.mxu0 %v6163_v35  ;;  %4456 = vmatprep.subr.bf16.mxu1 %v6166_v36 }
 0x39b   : > { %4129 = vmatpush1.bf16.msra.mxu0 %v6161_v37  ;;  %4457 = vmatpush1.bf16.msra.mxu1 %v6164_v38 }
 0x39c   : > { %4130 = vmatprep.subr.bf16.mxu0 %v6169_v39  ;;  %4458 = vmatprep.subr.bf16.mxu1 %v6172_v40 }
 0x39f   : > { %4131 = vmatpush1.bf16.msra.mxu0 %v6167_v42  ;;  %4459 = vmatpush1.bf16.msra.mxu1 %v6170_v43 }
 0x3a0   : > { %4132 = vmatprep.subr.bf16.mxu0 %v6175_v44  ;;  %4460 = vmatprep.subr.bf16.mxu1 %v6178_v46 }
 0x3a3   : > { %4133 = vmatpush1.bf16.msra.mxu0 %v6173_v47  ;;  %4461 = vmatpush1.bf16.msra.mxu1 %v6176_v48 }
 0x3a4   : > { %4134 = vmatprep.subr.bf16.mxu0 %v6181_v50  ;;  %4462 = vmatprep.subr.bf16.mxu1 %v6184_v41 }
 0x3a7   : > { %4135 = vmatpush1.bf16.msra.mxu0 %v6179_v52  ;;  %4463 = vmatpush1.bf16.msra.mxu1 %v6182_v45 }
 0x3a8   : > { %4136 = vmatprep.subr.bf16.mxu0 %v6187_v53  ;;  %4464 = vmatprep.subr.bf16.mxu1 %v6190_v54 }
 0x3ab   : > { %4137 = vmatpush1.bf16.msra.mxu0 %v6185_v55  ;;  %4465 = vmatpush1.bf16.msra.mxu1 %v6188_v49 }
 0x3ac   : > { %4138 = vmatprep.subr.bf16.mxu0 %v6193_v57  ;;  %4466 = vmatprep.subr.bf16.mxu1 %v6196_v58 }
 0x3af   : > { %4139 = vmatpush1.bf16.msra.mxu0 %v6191_v59  ;;  %4467 = vmatpush1.bf16.msra.mxu1 %v6194_v51 }
 0x3b2   : > { %4141 = vmatmul.mubr.bf16.vlgmr.msra.gmra.mrb[0].mxu0 %v4714_v61  ;;  %4469 = vmatmul.mubr.bf16.vlgmr.msra.gmra.mrb[0].mxu1 %v4714_v61 }
 0x485   : > { %v4142_v7 = vpop.f32.mrb[0].mxu0  ;;  %v4470_v8 = vpop.f32.mrb[0].mxu1 }
 0x486   : > { %v5239_v9 = vadd.f32 %v4142_v7, %v1188_v4  ;;  %v5241_v10 = vadd.f32 %v4470_v8, %v1196_v5  ;;  %v4144_v11 = vpop.f32.mrb[1].mxu0  ;;  %v4472_v12 = vpop.f32.mrb[1].mxu1 }
 0x487   : > { %v5240_v13 = vadd.f32 %v4144_v11, %v1192_v60  ;;  %v5242_v14 = vadd.f32 %v4472_v12, %v1200_v6  ;;  %v4146_v15 = vpop.f32.mrb[2].mxu0  ;;  %v4474_v16 = vpop.f32.mrb[2].mxu1 }
 0x488   : > { %4501 = vst [vmem:[%s6685_s0] sm:$0xff] %v5239_v9  ;;  %4503 = vst [vmem:[%s6685_s0 + $0x10] sm:$0xff] %v5241_v10  ;;  %v4147_v17 = vpop.f32.mrb[3].mxu0  ;;  %v4475_v18 = vpop.f32.mrb[3].mxu1 }
 0x489   : > { %v5237_v19 = vpack.c.bf16 %v5240_v13, %v5239_v9  ;;  %4502 = vst [vmem:[%s6685_s0 + $0x8] sm:$0xff] %v5240_v13  ;;  %v5238_v0 = vpack.c.bf16 %v5242_v14, %v5241_v10  ;;  %4504 = vst [vmem:[%s6685_s0 + $0x18] sm:$0xff] %v5242_v14 }
 0x48b   : > { %4499 = vst [vmem:[%s4498_s3] sm:$0xff] %v5237_v19  ;;  %4500 = vst [vmem:[%s4498_s3 + $0x8] sm:$0xff] %v5238_v0 }
 0x48c PF: > { %s18_s25 = sadd.s32 1, %s6385_s25   ;;  %s7408_s15 = sld [smem:[#allocation12_spill]] }
 0x48d   : > { %p15_p10 = scmp.ge.s32.totalorder %s18_s25, 34   ;;  %s7409_s16 = smov %s6353_s17 }
 0x48e   : > { %s7410_s17 = smov %s6606_s6  ;;  %s7411_s18 = smov %s6361_s19 }
 0x48f   : > { %s7412_s19 = smov %s6365_s20  ;;  %s7413_s20 = smov %s6502_s13 }
 0x490   : > { %s7414_s21 = smov %s6377_s23  ;;  %s7415_s22 = smov %s6381_s24 }
 0x491   : > { %s7416_s23 = smov %s7419_s26  ;;  %s7417_s24 = smov %s7425_s27 }
 0x492   :  { %17 = sbr.rel (!%p15_p10) target bundleno = 12 (0xc), region = 104 }
 0x499   :  { %4527 = vsyncpa [#allocation4], 1 }
 0x49a   :  { %4529 = vsyncpa [#allocation4 + $0x1], 1 }
 0x49b   :  { %4530 = vsyncpa [#allocation6], 1 }
 0x49c   :  { %4532 = vsyncpa [#allocation6 + $0x1], 1 }

</bundles_post_ra>
